<compile_context>
chip_gen: v7x
topology: tpu7x:2x2x1
jax: 0.10.0
libtpu: 0.0.40
codegen_flags: <defaults>
</compile_context>

<pallas_src>
import functools
import math

import jax
import jax.numpy as jnp
from jax.experimental import pallas as pl
from jax.experimental.pallas import tpu as pltpu

_EPS = 1e-5
_LANES = 128


# ----------------------------------------------------------------------------
# Kernels
# ----------------------------------------------------------------------------
def _ln_kernel_rows(x_ref, w_ref, o_ref, *, inv_c, eps):
    """General path: one logical row per kernel row, reduce over the lane axis.

    NOTE: for ragged last grid blocks, the out-of-bounds rows of x_ref hold
    whatever happened to be in the buffer; they are computed on and then
    discarded by the masked output write.  Do not "fix" this by reading them.
    """
    x = x_ref[...].astype(jnp.float32)                        # (TM, C)
    mean = jnp.sum(x, axis=-1, keepdims=True) * inv_c
    diff = x - mean
    var = jnp.sum(diff * diff, axis=-1, keepdims=True) * inv_c
    y = x * jax.lax.rsqrt(var + eps) * w_ref[...].astype(jnp.float32)
    o_ref[...] = y.astype(o_ref.dtype)


def _ln_kernel_packed(x_ref, w_ref, m_ref, o_ref, *, inv_c, eps):
    """Lane-dense path: Q = W // C logical rows packed per W-lane kernel row.

    Per-logical-row sums are segmented lane reductions computed as a matmul
    with a block-diagonal 0/1 matrix `m` (W x W) on the otherwise idle MXU.
    A manual bf16 hi/lo split keeps ~f32 accuracy (per-sum relative error
    ~2^-16 -- well inside LayerNorm tolerance for the deployed C values)
    without relying on Precision.HIGHEST lowering.
    """
    x = x_ref[...].astype(jnp.float32)                        # (TM, W)
    m = m_ref[...]                                            # (W, W) bf16 0/1
    w = w_ref[...].astype(jnp.float32)                        # (1, W)

    def seg_sum(v):
        hi = v.astype(jnp.bfloat16)
        lo = (v - hi.astype(jnp.float32)).astype(jnp.bfloat16)
        s = jnp.dot(hi, m, preferred_element_type=jnp.float32)
        return s + jnp.dot(lo, m, preferred_element_type=jnp.float32)

    mean = seg_sum(x) * inv_c
    diff = x - mean
    var = seg_sum(diff * diff) * inv_c
    y = x * jax.lax.rsqrt(var + eps) * w
    o_ref[...] = y.astype(o_ref.dtype)


# ----------------------------------------------------------------------------
# Hardware heuristics & tiling
# ----------------------------------------------------------------------------
def _chip_generation():
    """Best-effort TPU generation (5 / 6 / 7); unknown defaults to 6."""
    try:
        kind = jax.devices()[0].device_kind.lower()
    except Exception:
        return 6
    if "v7" in kind or "7x" in kind:
        return 7
    if "v6" in kind:
        return 6
    if "v5" in kind or "v4" in kind or "v3" in kind or "v2" in kind:
        return 5
    return 6


def _vmem_limit_bytes(gen):
    try:
        cap = pltpu.get_tpu_info().vmem_capacity_bytes
    except Exception:
        cap = (64 if gen >= 7 else 128) * 1024 * 1024
    if cap >= 100 * 1024 * 1024:            # v5e / v6e class: 128 MiB physical
        return 64 * 1024 * 1024
    # v7x class (64 MiB physical): ~44 MiB scoped limit, headroom left for XLA.
    return min(44 * 1024 * 1024, int(cap * 0.7))


def _round_up(a, b):
    return -(-a // b) * b


def _pick_tile_rows(n_rows, lane_width, itemsize, vmem_limit, sublane,
                    min_grid_steps=1, max_tile_rows=None, fixed_vmem_bytes=0,
                    target_in_tile_bytes=8 * 1024 * 1024):
    """Largest sublane-aligned block height within the VMEM / tile-size budget."""
    row_in = lane_width * itemsize
    row_out = row_in
    # double-buffered input + output blocks + ~4 live f32 temporaries per row
    per_row = 2 * row_in + 2 * row_out + 4 * lane_width * 4
    budget = max(int(vmem_limit * 0.75) - fixed_vmem_bytes, per_row * sublane)
    tm = min(target_in_tile_bytes // row_in, budget // per_row)
    if max_tile_rows is not None:
        tm = min(tm, max_tile_rows)
    if min_grid_steps > 1 and n_rows > sublane:
        # Keep >= min_grid_steps grid steps so ("parallel",) can shard the row
        # axis across both v7x TensorCores (no effect on single-TC v5e/v6e).
        tm = min(tm, _round_up(pl.cdiv(n_rows, min_grid_steps), sublane))
    tm = max(sublane, (tm // sublane) * sublane)
    if tm >= n_rows:
        tm = n_rows                          # full-extent block is always legal
    return tm


# ----------------------------------------------------------------------------
# Wrapper
# ----------------------------------------------------------------------------
def _biasfree_layernorm_impl(x, weight, *, eps=_EPS, max_tile_rows=None):
    """BiasFree LayerNorm over the last dim.  x: (..., C), weight: (C,)."""
    orig_shape = x.shape
    C = orig_shape[-1]
    assert weight.shape == (C,), f"weight shape {weight.shape} != ({C},)"
    R = 1
    for d in orig_shape[:-1]:
        R *= d
    x2 = x.reshape(R, C)

    gen = _chip_generation()
    vmem_limit = _vmem_limit_bytes(gen)
    itemsize = jnp.dtype(x.dtype).itemsize
    sublane = max(8, 32 // itemsize)           # 8 for f32, 16 for bf16, 32 for i8
    min_grid_steps = 2 if gen >= 7 else 1      # use both v7x TensorCores

    # Lane-dense packing: Q logical rows per kernel row, W = Q*C = lcm(C, 128).
    Q = _LANES // math.gcd(C, _LANES)
    W_pack = Q * C
    # v5e: hi/lo mask-matmul beyond W=128 would make this HBM-bound kernel
    # MXU-bound (crossover ~240 flops/byte); v7x is marginal at 384; v6e is fine.
    w_max = 128 if gen <= 5 else (384 if gen >= 7 else 512)
    pack = (Q >= 2) and (W_pack <= w_max)

    fixed_vmem = 0
    if pack:
        W = W_pack
        Rp = _round_up(R, Q)
        if Rp != R:
            # Rows are independent; zero-padded rows are sliced away below.
            x2 = jnp.pad(x2, ((0, Rp - R), (0, 0)))
        Rk = Rp // Q
        xk = x2.reshape(Rk, W)                 # row-major: Q logical rows / kernel row
        wk = jnp.tile(weight, (Q,)).reshape(1, W)
        seg = jnp.arange(W, dtype=jnp.int32) // C
        mk = (seg[:, None] == seg[None, :]).astype(jnp.bfloat16)  # block-diag 0/1
        kernel = functools.partial(_ln_kernel_packed, inv_c=1.0 / C, eps=eps)
        extras = (wk, mk)
        extra_specs = [pl.BlockSpec((1, W), lambda i: (0, 0)),
                       pl.BlockSpec((W, W), lambda i: (0, 0))]
        fixed_vmem = 2 * (W * W * 2 + W * jnp.dtype(weight.dtype).itemsize)
    else:
        W = C
        Rk = R
        xk = x2
        wk = weight.reshape(1, C)
        kernel = functools.partial(_ln_kernel_rows, inv_c=1.0 / C, eps=eps)
        extras = (wk,)
        extra_specs = [pl.BlockSpec((1, C), lambda i: (0, 0))]

    tm = _pick_tile_rows(Rk, W, itemsize, vmem_limit, sublane,
                         min_grid_steps=min_grid_steps,
                         max_tile_rows=max_tile_rows,
                         fixed_vmem_bytes=fixed_vmem)
    grid = (pl.cdiv(Rk, tm),)

    out = pl.pallas_call(
        kernel,
        out_shape=jax.ShapeDtypeStruct((Rk, W), x.dtype),
        grid_spec=pltpu.PrefetchScalarGridSpec(
            num_scalar_prefetch=0,
            grid=grid,
            in_specs=[pl.BlockSpec((tm, W), lambda i: (i, 0))] + extra_specs,
            out_specs=pl.BlockSpec((tm, W), lambda i: (i, 0)),
        ),
        compiler_params=pltpu.CompilerParams(
            dimension_semantics=("parallel",),
            vmem_limit_bytes=vmem_limit,
        ),
    )(xk, *extras)

    if pack:
        out = out.reshape(Rk * Q, C)[:R]
    return out.reshape(orig_shape)


# jit so the tiled weight / block-diagonal mask construction is constant-folded
# rather than emitted as separate eager XLA ops next to a memory-bound kernel.
biasfree_layernorm = jax.jit(_biasfree_layernorm_impl,
                             static_argnames=("eps", "max_tile_rows"))


def _reference(x, weight):
    xf = x.astype(jnp.float32)
    var = jnp.var(xf, axis=-1, keepdims=True)         # biased, over last dim
    y = xf / jnp.sqrt(var + _EPS) * weight.astype(jnp.float32)
    return y.astype(x.dtype)


if __name__ == "__main__":
    key = jax.random.PRNGKey(0)
    k1, k2, k3, k4, kw1, kw3, kw4 = jax.random.split(key, 7)

    def check(y, x, w, atol, rtol, name):
        ref = _reference(x, w)
        ok = jnp.allclose(y.astype(jnp.float32), ref.astype(jnp.float32),
                          atol=atol, rtol=rtol)
        assert bool(ok), f"{name} mismatch"

    # 1) Restormer-like channels C=48 (lcm(48,128)=384): lane-dense packed path
    #    on v6e/v7x, unpacked on v5e.  Non-trivial weight exercises the tiling.
    x1 = jax.random.normal(k1, (2, 8, 8, 48), dtype=jnp.float32)
    w1 = 1.0 + 0.1 * jax.random.normal(kw1, (48,), dtype=jnp.float32)
    y1 = jax.block_until_ready(biasfree_layernorm(x1, w1))
    check(y1, x1, w1, 1e-4, 1e-4, "case 1 (C=48 packed)")

    # 2) Same channels, row count NOT a multiple of Q (pad-to-Q path) plus a
    #    small tile cap to force a ragged grid with a masked last block.
    x2 = jax.random.normal(k2, (3, 27, 48), dtype=jnp.float32)
    y2 = jax.block_until_ready(biasfree_layernorm(x2, w1, max_tile_rows=8))
    check(y2, x2, w1, 1e-4, 1e-4, "case 2 (C=48 ragged/padded)")

    # 3) C=32 divides 128: W=128 packed path, enabled on every generation.
    x3 = jax.random.normal(k3, (2, 64, 32), dtype=jnp.float32)
    w3 = 1.0 + 0.1 * jax.random.normal(kw3, (32,), dtype=jnp.float32)
    y3 = jax.block_until_ready(biasfree_layernorm(x3, w3))
    check(y3, x3, w3, 5e-5, 5e-5, "case 3 (C=32 packed)")

    # 4) General (unpacked) path: C=100 does not pack within the lane budget.
    x4 = jax.random.normal(k4, (2, 16, 100), dtype=jnp.float32)
    w4 = 1.0 + 0.1 * jax.random.normal(kw4, (100,), dtype=jnp.float32)
    y4 = jax.block_until_ready(biasfree_layernorm(x4, w4))
    check(y4, x4, w4, 2e-5, 2e-5, "case 4 (C=100 unpacked)")

    # 5) bf16 input, C=96 (Q=4, W=384): exercises 16-row sublane alignment.
    x5 = jax.random.normal(k1, (4, 24, 96), dtype=jnp.float32).astype(jnp.bfloat16)
    w5 = 1.0 + 0.1 * jax.random.normal(kw1, (96,), dtype=jnp.float32)
    y5 = jax.block_until_ready(biasfree_layernorm(x5, w5))
    check(y5, x5, w5, 5e-2, 5e-2, "case 5 (C=96 bf16 packed)")

    print("KERNEL_OK")
</pallas_src>

<mosaic_0001>
module attributes {stable_mosaic.version = 11 : i64} {
  func.func @_ln_kernel_packed(%arg0: i32, %arg1: memref<16x384xf32, #tpu.memory_space<vmem>>, %arg2: memref<1x384xf32, #tpu.memory_space<vmem>>, %arg3: memref<384x384xbf16, #tpu.memory_space<vmem>>, %arg4: memref<16x384xf32, #tpu.memory_space<vmem>>) attributes {dimension_semantics = [#tpu.dimension_semantics<parallel>], iteration_bounds = array<i64: 1>, scalar_prefetch = 0 : i64, scratch_operands = 0 : i64, tpu.core_type = #tpu.core_type<tc>, window_params = [{transform_indices = @transform_0, window_bounds = array<i64: 16, 384>}, {pipeline_mode = #tpu.pipeline_mode<synchronous>, transform_indices = @transform_1, window_bounds = array<i64: 1, 384>}, {pipeline_mode = #tpu.pipeline_mode<synchronous>, transform_indices = @transform_2, window_bounds = array<i64: 384, 384>}, {transform_indices = @transform_3, window_bounds = array<i64: 16, 384>}]} {
    %c0 = arith.constant 0 : index
    %c0_0 = arith.constant 0 : index
    %0 = vector.load %arg1[%c0, %c0_0] : memref<16x384xf32, #tpu.memory_space<vmem>>, vector<16x384xf32>
    %c0_1 = arith.constant 0 : index
    %c0_2 = arith.constant 0 : index
    %1 = vector.load %arg3[%c0_1, %c0_2] : memref<384x384xbf16, #tpu.memory_space<vmem>>, vector<384x384xbf16>
    %c0_3 = arith.constant 0 : index
    %c0_4 = arith.constant 0 : index
    %2 = vector.load %arg2[%c0_3, %c0_4] : memref<1x384xf32, #tpu.memory_space<vmem>>, vector<1x384xf32>
    %3 = arith.truncf %0 : vector<16x384xf32> to vector<16x384xbf16>
    %4 = arith.extf %3 : vector<16x384xbf16> to vector<16x384xf32>
    %5 = arith.subf %0, %4 : vector<16x384xf32>
    %6 = arith.truncf %5 : vector<16x384xf32> to vector<16x384xbf16>
    %cst = arith.constant dense<0.000000e+00> : vector<16x384xf32>
    %7 = tpu.matmul %3, %1, %cst {dimension_numbers = #tpu.dot_dimension_numbers<[1], [0], [0], [1], [0, 0, 1, 1], [], []>} : vector<16x384xbf16>, vector<384x384xbf16>, vector<16x384xf32> -> vector<16x384xf32>
    %cst_5 = arith.constant dense<0.000000e+00> : vector<16x384xf32>
    %8 = tpu.matmul %6, %1, %cst_5 {dimension_numbers = #tpu.dot_dimension_numbers<[1], [0], [0], [1], [0, 0, 1, 1], [], []>} : vector<16x384xbf16>, vector<384x384xbf16>, vector<16x384xf32> -> vector<16x384xf32>
    %9 = arith.addf %7, %8 : vector<16x384xf32>
    %cst_6 = arith.constant 0.020833334 : f32
    %10 = vector.broadcast %cst_6 : f32 to vector<16x384xf32>
    %11 = arith.mulf %9, %10 : vector<16x384xf32>
    %12 = arith.subf %0, %11 : vector<16x384xf32>
    %13 = arith.mulf %12, %12 : vector<16x384xf32>
    %14 = arith.truncf %13 : vector<16x384xf32> to vector<16x384xbf16>
    %15 = arith.extf %14 : vector<16x384xbf16> to vector<16x384xf32>
    %16 = arith.subf %13, %15 : vector<16x384xf32>
    %17 = arith.truncf %16 : vector<16x384xf32> to vector<16x384xbf16>
    %cst_7 = arith.constant dense<0.000000e+00> : vector<16x384xf32>
    %18 = tpu.matmul %14, %1, %cst_7 {dimension_numbers = #tpu.dot_dimension_numbers<[1], [0], [0], [1], [0, 0, 1, 1], [], []>} : vector<16x384xbf16>, vector<384x384xbf16>, vector<16x384xf32> -> vector<16x384xf32>
    %cst_8 = arith.constant dense<0.000000e+00> : vector<16x384xf32>
    %19 = tpu.matmul %17, %1, %cst_8 {dimension_numbers = #tpu.dot_dimension_numbers<[1], [0], [0], [1], [0, 0, 1, 1], [], []>} : vector<16x384xbf16>, vector<384x384xbf16>, vector<16x384xf32> -> vector<16x384xf32>
    %20 = arith.addf %18, %19 : vector<16x384xf32>
    %cst_9 = arith.constant 0.020833334 : f32
    %21 = vector.broadcast %cst_9 : f32 to vector<16x384xf32>
    %22 = arith.mulf %20, %21 : vector<16x384xf32>
    %cst_10 = arith.constant 9.99999974E-6 : f32
    %23 = vector.broadcast %cst_10 : f32 to vector<16x384xf32>
    %24 = arith.addf %22, %23 : vector<16x384xf32>
    %25 = math.rsqrt %24 : vector<16x384xf32>
    %26 = arith.mulf %0, %25 : vector<16x384xf32>
    %27 = vector.broadcast %2 : vector<1x384xf32> to vector<16x384xf32>
    %28 = arith.mulf %26, %27 : vector<16x384xf32>
    %c0_11 = arith.constant 0 : index
    %c0_12 = arith.constant 0 : index
    %29 = vector.load %arg4[%c0_11, %c0_12] : memref<16x384xf32, #tpu.memory_space<vmem>>, vector<16x384xf32>
    tpu.vector_store %arg4[%c0_11, %c0_12], %28 {strides = array<i32>} : memref<16x384xf32, #tpu.memory_space<vmem>>, vector<16x384xf32>,
    return
  }
  func.func @transform_0(%arg0: i32) -> (i32, i32) {
    %c0_i32 = arith.constant 0 : i32
    %c0_i32_0 = arith.constant 0 : i32
    return %arg0, %c0_i32 : i32, i32
  }
  func.func @transform_1(%arg0: i32) -> (i32, i32) {
    %c0_i32 = arith.constant 0 : i32
    %c0_i32_0 = arith.constant 0 : i32
    %c0_i32_1 = arith.constant 0 : i32
    return %c0_i32, %c0_i32_0 : i32, i32
  }
  func.func @transform_2(%arg0: i32) -> (i32, i32) {
    %c0_i32 = arith.constant 0 : i32
    %c0_i32_0 = arith.constant 0 : i32
    %c0_i32_1 = arith.constant 0 : i32
    return %c0_i32, %c0_i32_0 : i32, i32
  }
  func.func @transform_3(%arg0: i32) -> (i32, i32) {
    %c0_i32 = arith.constant 0 : i32
    %c0_i32_0 = arith.constant 0 : i32
    return %arg0, %c0_i32 : i32, i32
  }
}

</mosaic_0001>

<bundles_post_ra>
// kernel: tile.8
= control target key start
LH: loop header
LB: loop body
LE: loop exit
PB: predicated region body
PF: predicated region fallthrough
CT: control target
= control target key end

     0   :  { %s22_s0 = inlined_call_operand.vmem [shape: f32[48], index: 0, kind: input, shape index: {}]   ;;  %s23_s1 = inlined_call_operand.vmem [shape: f32[8,48], index: 1, kind: output, shape index: {}]  }
   0x1   :  { %v4_v0 = vld [vmem:[%s22_s0] ss:$0 sm:$0xff] }
   0x2   :  { %5 = vst [vmem:[%s23_s1] sm:$0xff] %v4_v0 }

// kernel: tile.9
= control target key start
LH: loop header
LB: loop body
LE: loop exit
PB: predicated region body
PF: predicated region fallthrough
CT: control target
= control target key end

     0   :  { %vm10_vm0 = vcmask 130048   ;;  %vm14_vm1 = vcmask 261120   ;;  %s136_s14 = smov 112   ;;  %s137_s15 = smov 80   ;;  %vm4_vm2 = vcmask 392192   ;;  %s200_s0 = inlined_call_operand.vmem [shape: f32[8,48], index: 0, kind: input, shape index: {}]   ;;  %s201_s1 = inlined_call_operand.hbm [shape: f32[1,384], index: 1, kind: output, shape index: {}]  }
   0x1   :  { %v95_v0 = vld [vmem:[%s200_s0 + $0x5] sm:$0x1]   ;;  %v99_v3 = vld [vmem:[%s200_s0 + $0x7] sm:$0x1]   ;;  %v97_v4 = vld [vmem:[%s200_s0 + $0x2] sm:$0x1]  }
   0x2   :  { %v96_v1 = vld [vmem:[%s200_s0 + $0x5] sm:$0x1]   ;;  %35 = vrot.lane.b32.xlu1 %v99_v3, %s137_s15  ;;  %v98_v5 = vld [vmem:[%s200_s0 + $0x2] sm:$0x1]   ;;  %v100_v7 = vld [vmem:[%s200_s0 + $0x4] sm:$0x1]  }
   0x3   :  { %v11_v2 = vsel %vm10_vm0, %v96_v1, %v95_v0  ;;  %v25_v6 = vsel %vm14_vm1, %v98_v5, %v97_v4  ;;  %v3_v8 = vld [vmem:[%s200_s0] sm:$0x1]   ;;  %s138_s22 = smov 96   ;;  %s139_s23 = smov 64  }
   0x4   :  { %12 = vrot.lane.b32.xlu0 %v11_v2, %s136_s14  ;;  %5 = vst.msk [vmem:[#allocation2] sm:$0x1] %vm4_vm2, %v3_v8  }
   0x6   :  { %42 = vrot.lane.b32.xlu1 %v100_v7, %s139_s23 }
   0x8   :  { %26 = vrot.lane.b32.xlu0 %v25_v6, %s138_s22 }
   0x9   :  { %2 = vsyncpa [#allocation1], 0  ;;  %v101_v9 = vld [vmem:[%s200_s0 + $0x1] sm:$0x1]   ;;  %v102_v10 = vld [vmem:[%s200_s0 + $0x6] sm:$0x1]  }
   0xa   :  { %s140_s28 = smov 48   ;;  %s141_s29 = smov 32   ;;  %v103_v11 = vld [vmem:[%s200_s0 + $0x3] sm:$0x1]   ;;  %vm17_vm3 = vcmask 1048448   ;;  %vm37_vm4 = vcmask 1048192  }
   0xb   :  { %55 = vrot.lane.b32.xlu1 %v102_v10, %s141_s29  ;;  %s142_s0 = smov 16   ;;  %vm31_vm5 = vcmask 1048320   ;;  %vm44_vm6 = vcmask 916992   ;;  %vm51_vm7 = vcmask 785792   ;;  %vm57_vm8 = vcmask 654592   ;;  %s143_s3 = smov [#allocation0]  }
   0xc   :  { %49 = vrot.lane.b32.xlu0 %v101_v9, %s140_s28  ;;  %vm64_vm9 = vcmask 523392   ;;  %s88_s4 = sshll.u32 %s143_s3, 4  ;;  %s89_s4 = int_to_ptr.vmem [resolvable:$true] %s88_s4 }
   0xd   :  { %s112_s5 = scalar_lea.vmem %s89_s4, 48  ;;  %s116_s6 = scalar_lea.vmem %s89_s4, 64 }
   0xe   :  { %p113_p0 = scmp.ne.s32.totalorder %s89_s4, %s112_s5  ;;  %p117_p1 = scmp.lt.s32.totalorder %s89_s4, %s89_s4 }
   0xf   :  { %p118_p2 = scmp.lt.s32.totalorder %s116_s6, %s112_s5 }
  0x10   :  { %62 = vrot.lane.b32.xlu0 %v103_v11, %s142_s0 }
  0x11   :  { %p119_p3 = por %p118_p2, %p117_p1 }
  0x13   :  { %p120_p4 = pnand %p119_p3, %p113_p0 }
  0x74   :  { %v36_v13 = vpop.permute.xlu1 %35  }
  0x76   :  { %v13_v12 = vpop.permute.xlu0 %12  }
  0x77   :  { %16 = vst.msk [vmem:[#allocation2 + $0x10] sm:$0x1] %vm14_vm1, %v13_v12  }
  0x78   :  { %19 = vst.msk [vmem:[#allocation2 + $0x8] sm:$0x1] %vm17_vm3, %v13_v12   ;;  %v43_v15 = vpop.permute.xlu1 %42  }
  0x79   :  { %39 = vst.msk [vmem:[#allocation2 + $0x10] sm:$0x1] %vm37_vm4, %v36_v13  }
  0x7a   :  { %v27_v14 = vpop.permute.xlu0 %26  }
  0x7b   :  { %30 = vst.msk [vmem:[#allocation2 + $0x8] sm:$0x1] %vm10_vm0, %v27_v14  }
  0x7c   :  { %32 = vst.msk [vmem:[#allocation2] sm:$0x1] %vm31_vm5, %v27_v14  }
  0x7d   :  { %46 = vst.msk [vmem:[#allocation2 + $0x8] sm:$0x1] %vm44_vm6, %v43_v15   ;;  %v56_v17 = vpop.permute.xlu1 %55  }
  0x7e   :  { %v50_v16 = vpop.permute.xlu0 %49   ;;  %59 = vst.msk [vmem:[#allocation2 + $0x10] sm:$0x1] %vm57_vm8, %v56_v17  }
  0x7f   :  { %52 = vst.msk [vmem:[#allocation2] sm:$0x1] %vm51_vm7, %v50_v16  }
  0x82   :  { %v63_v18 = vpop.permute.xlu0 %62  }
  0x83   :  { %66 = vst.msk [vmem:[#allocation2 + $0x8] sm:$0x1] %vm64_vm9, %v63_v18  }
  0x85   :  { %v79_v20 = vld [vmem:[#allocation2 + $0x10] sm:$0x1] }
  0x86   :  { %v70_v19 = vld [vmem:[#allocation2] sm:$0x1]  ;;  %83 = vst [vmem:[#allocation0 + $0x2] sm:$0x1] %v79_v20 }
  0x87   :  { %72 = vst [vmem:[#allocation0] sm:$0x1] %v70_v19 }
  0x8a   :  { %v74_v21 = vld [vmem:[#allocation2 + $0x8] sm:$0x1] }
  0x8b   :  { %77 = vst [vmem:[#allocation0 + $0x1] sm:$0x1] %v74_v21 }
  0x8c   :  { %123 = shalt.err (!%p120_p4)
}
  0x8d   :  { %s124_s9 = scalar_lea.hbm %s201_s1, 48 }
  0x8e   :  { %p125_p5 = scmp.ne.s32.totalorder %s201_s1, %s124_s9  ;;  %p128_p6 = scmp.lt.u32.totalorder %s124_s9, %s201_s1 }
  0x90   :  { %p130_p7 = pnand %p128_p6, %p125_p5 }
  0x92   :  { %133 = shalt.err (!%p130_p7)
}
  0x93   :  { %91 = dma.vmem_to_hbm [thread:$0]  %s89_s4, 48, %s201_s1, [#allocation1]  }
  0x94   :  { %134 = dma.done.wait [#allocation1], 48  }
  0x95   :  { %135 = vsyncadd [#allocation1], 4294967248 }
  0x96   :  { %93 = vsyncpa [#allocation1], 1 }

// kernel: _biasfree_layernorm_impl.1
= control target key start
LH: loop header
LB: loop body
LE: loop exit
PB: predicated region body
PF: predicated region fallthrough
CT: control target
= control target key end

     0   :  { %8 = vsyncpa [#allocation3], 0  ;;  %s2509_s0 = inlined_call_operand.hbm [shape: f32[16,384], index: 0, kind: input, shape index: {}]   ;;  %s2510_s1 = inlined_call_operand.hbm [shape: f32[1,384], index: 1, kind: input, shape index: {}]   ;;  %s2511_s2 = inlined_call_operand.hbm [shape: bf16[384,384], index: 2, kind: input, shape index: {}]   ;;  %s2512_s3 = inlined_call_operand.hbm [shape: f32[16,384], index: 3, kind: output, shape index: {}]  }
   0x1   :  { %9 = vsyncpa [#allocation6], 0 }
   0x2   :  { %10 = vsyncpa [#allocation4], 0  ;;  %s1875_s12 = smov [#allocation5]   ;;  %s1876_s14 = smov [#allocation2]  }
   0x3   :  { %s29_s13 = sshll.u32 %s1875_s12, 4  ;;  %s16_s15 = sshll.u32 %s1876_s14, 4  ;;  %s30_s13 = int_to_ptr.vmem [resolvable:$true] %s29_s13  ;;  %s1906_s15 = int_to_ptr.vmem [resolvable:$true] %s16_s15 }
   0x4   :  { %s1781_s18 = scalar_lea.hbm %s2510_s1, 48 }
   0x5   :  { %p1782_p0 = scmp.ne.s32.totalorder %s2510_s1, %s1781_s18  ;;  %p1785_p1 = scmp.lt.u32.totalorder %s1781_s18, %s2510_s1 }
   0x7   :  { %p1787_p2 = pnand %p1785_p1, %p1782_p0 }
   0x9   :  { %1790 = shalt.err (!%p1787_p2)
}
   0xa   :  { %s1791_s23 = scalar_lea.vmem %s30_s13, 48  ;;  %s1795_s24 = scalar_lea.vmem %s30_s13, 64 }
   0xb   :  { %p1792_p3 = scmp.ne.s32.totalorder %s30_s13, %s1791_s23  ;;  %p1796_p4 = scmp.lt.s32.totalorder %s30_s13, %s30_s13 }
   0xc   :  { %p1797_p5 = scmp.lt.s32.totalorder %s1795_s24, %s1791_s23 }
   0xe   :  { %p1798_p6 = por %p1797_p5, %p1796_p4 }
  0x10   :  { %p1799_p7 = pnand %p1798_p6, %p1792_p3 }
  0x12   :  { %1802 = shalt.err (!%p1799_p7)
}
  0x13   :  { %32 = dma.hbm_to_vmem [thread:$0]  %s2510_s1, 48, %s30_s13, [#allocation6]  }
  0x14   :  { %s1803_s29 = scalar_lea.hbm %s2509_s0, 768 }
  0x15   :  { %p1804_p8 = scmp.ne.s32.totalorder %s2509_s0, %s1803_s29  ;;  %p1807_p9 = scmp.lt.u32.totalorder %s1803_s29, %s2509_s0 }
  0x17   :  { %p1809_p10 = pnand %p1807_p9, %p1804_p8 }
  0x19   :  { %1812 = shalt.err (!%p1809_p10)
}
  0x1a   :  { %s1813_s7 = scalar_lea.vmem %s1906_s15, 768  ;;  %p1818_p12 = scmp.lt.s32.totalorder %s1906_s15, %s1906_s15 }
  0x1b   :  { %p1814_p11 = scmp.ne.s32.totalorder %s1906_s15, %s1813_s7  ;;  %p1819_p13 = scmp.lt.s32.totalorder %s1813_s7, %s1813_s7 }
  0x1d   :  { %p1820_p0 = por %p1819_p13, %p1818_p12 }
  0x1f   :  { %p1821_p1 = pnand %p1820_p0, %p1814_p11 }
  0x21   :  { %1824 = shalt.err (!%p1821_p1)
}
  0x22   :  { %s1877_s1 = smov 384   ;;  %s1878_s8 = smov 24  }
  0x23   :  { %22 = dma.hbm_to_vmem [thread:$0]  %s2509_s0, 768, %s1906_s15, [#allocation3], %s1877_s1, %s1877_s1, %s1878_s8  }
  0x24   :  { %s1879_s11 = smov [#allocation7]   ;;  %s1825_s16 = scalar_lea.hbm %s2511_s2, 9216 }
  0x25   :  { %s38_s12 = sshll.u32 %s1879_s11, 4  ;;  %p1826_p2 = scmp.ne.s32.totalorder %s2511_s2, %s1825_s16  ;;  %s39_s12 = int_to_ptr.vmem [resolvable:$true] %s38_s12 }
  0x26   :  { %p1829_p3 = scmp.lt.u32.totalorder %s1825_s16, %s2511_s2 }
  0x28   :  { %p1831_p4 = pnand %p1829_p3, %p1826_p2 }
  0x2a   :  { %1834 = shalt.err (!%p1831_p4)
}
  0x2b   :  { %s1835_s21 = scalar_lea.vmem %s39_s12, 9216  ;;  %p1840_p6 = scmp.lt.s32.totalorder %s39_s12, %s39_s12 }
  0x2c   :  { %p1836_p5 = scmp.ne.s32.totalorder %s39_s12, %s1835_s21  ;;  %p1841_p7 = scmp.lt.s32.totalorder %s1835_s21, %s1835_s21 }
  0x2e   :  { %p1842_p8 = por %p1841_p7, %p1840_p6 }
  0x30   :  { %p1843_p9 = pnand %p1842_p8, %p1836_p5 }
  0x32   :  { %1846 = shalt.err (!%p1843_p9)
}
  0x33   :  { %s1880_s0 = smov 192   ;;  %s1881_s15 = smov 12  }
  0x34   :  { %44 = dma.hbm_to_vmem [thread:$0]  %s2511_s2, 9216, %s39_s12, [#allocation6], %s1880_s0, %s1880_s0, %s1881_s15  }
  0x35   :  { %1869 = dma.done.wait [#allocation3], 768  }
  0x36   :  { %1870 = vsyncadd [#allocation3], 4294966528 }
  0x37   :  { %1871 = dma.done.wait [#allocation6], 9264  }
  0x38   :  { %1872 = vsyncadd [#allocation6], 4294958032  ;;  %v1952_v0 = vld [vmem:[#allocation7 + $0x4] ss:$12 sps:$4 sm:$0xff]   ;;  %v1954_v1 = vld [vmem:[#allocation7 + $0xc8] ss:$12 sps:$4 sm:$0xff]  }
  0x39   :  { %560 = vmatprep.subr.bf16.mxu0 %v1952_v0  ;;  %v1957_v2 = vld [vmem:[#allocation7] ss:$12 sps:$4 sm:$0xff]   ;;  %1410 = vmatprep.subr.bf16.mxu1 %v1954_v1  ;;  %v1960_v3 = vld [vmem:[#allocation7 + $0x8] ss:$12 sps:$4 sm:$0xff]   ;;  %v1968_v6 = vld [vmem:[#allocation7 + $0x18] ss:$12 sps:$4 sm:$0xff]  }
  0x3a   :  { %561 = vmatpush1.bf16.msra.mxu0 %v1957_v2  ;;  %v1963_v4 = vld [vmem:[#allocation7 + $0x1c] ss:$12 sps:$4 sm:$0xff]   ;;  %1411 = vmatpush3.bf16.msra.mxu1 %v1960_v3  ;;  %v1966_v5 = vld [vmem:[#allocation7 + $0xe0] ss:$12 sps:$4 sm:$0xff]   ;;  %v1977_v9 = vld [vmem:[#allocation7 + $0xf8] ss:$12 sps:$4 sm:$0xff]  }
  0x3b   :  { %562 = vmatprep.subr.bf16.mxu0 %v1963_v4  ;;  %v1971_v7 = vld [vmem:[#allocation7 + $0x20] ss:$12 sps:$4 sm:$0xff]   ;;  %1412 = vmatprep.subr.bf16.mxu1 %v1966_v5  ;;  %2580 = vst [vmem:[#allocation12_spill] sm:$0xff] %v1977_v9  ;;  %v1979_v10 = vld [vmem:[#allocation7 + $0x30] ss:$12 sps:$4 sm:$0xff]   ;;  %v2042_v32 = vld [vmem:[#allocation2 + $0x8] sm:$0xff] }
  0x3c   :  { %v1974_v8 = vld [vmem:[#allocation7 + $0x34] ss:$12 sps:$4 sm:$0xff]   ;;  %2581 = vst [vmem:[#allocation13_spill] sm:$0xff] %v1979_v10  ;;  %v1983_v11 = vld [vmem:[#allocation7 + $0x38] ss:$12 sps:$4 sm:$0xff]   ;;  %2598 = vst [vmem:[#allocation30_spill] sm:$0xff] %v2042_v32 }
  0x3d   :  { %2582 = vst [vmem:[#allocation14_spill] sm:$0xff] %v1983_v11  ;;  %v1986_v12 = vld [vmem:[#allocation7 + $0x4c] ss:$12 sps:$4 sm:$0xff]   ;;  %v1988_v13 = vld [vmem:[#allocation7 + $0x110] ss:$12 sps:$4 sm:$0xff]   ;;  %v2057_v37 = vld [vmem:[#allocation2 + $0x18] sm:$0xff] }
  0x3e   :  { %563 = vmatpush1.bf16.msra.mxu0 %v1968_v6  ;;  %1413 = vmatpush3.bf16.msra.mxu1 %v1971_v7  ;;  %2583 = vst [vmem:[#allocation15_spill] sm:$0xff] %v1986_v12  ;;  %2584 = vst [vmem:[#allocation16_spill] sm:$0xff] %v1988_v13  ;;  %v1991_v14 = vld [vmem:[#allocation7 + $0x48] ss:$12 sps:$4 sm:$0xff]   ;;  %v1995_v15 = vld [vmem:[#allocation7 + $0x50] ss:$12 sps:$4 sm:$0xff]  }
  0x3f   :  { %564 = vmatprep.subr.bf16.mxu0 %v1974_v8  ;;  %1414 = vmatprep.subr.bf16.mxu1 %v1977_v9  ;;  %2585 = vst [vmem:[#allocation17_spill] sm:$0xff] %v1991_v14  ;;  %2586 = vst [vmem:[#allocation18_spill] sm:$0xff] %v1995_v15  ;;  %v1998_v16 = vld [vmem:[#allocation7 + $0x64] ss:$12 sps:$4 sm:$0xff]   ;;  %v2000_v17 = vld [vmem:[#allocation7 + $0x128] ss:$12 sps:$4 sm:$0xff]  }
  0x40   :  { %2587 = vst [vmem:[#allocation19_spill] sm:$0xff] %v2000_v17  ;;  %v2002_v18 = vld [vmem:[#allocation7 + $0x60] ss:$12 sps:$4 sm:$0xff]   ;;  %v2005_v19 = vld [vmem:[#allocation7 + $0x68] ss:$12 sps:$4 sm:$0xff]   ;;  %2602 = vst [vmem:[#allocation34_spill] sm:$0xff] %v2057_v37 }
  0x41   :  { %v2009_v20 = vld [vmem:[#allocation7 + $0x7c] ss:$12 sps:$4 sm:$0xff]   ;;  %v2012_v21 = vld [vmem:[#allocation7 + $0x140] ss:$12 sps:$4 sm:$0xff]   ;;  %v2014_v22 = vld [vmem:[#allocation7 + $0x78] ss:$12 sps:$4 sm:$0xff]  }
  0x42   :  { %565 = vmatpush1.bf16.msra.mxu0 %v1979_v10  ;;  %1415 = vmatpush3.bf16.msra.mxu1 %v1983_v11  ;;  %2588 = vst [vmem:[#allocation20_spill] sm:$0xff] %v2014_v22  ;;  %v2017_v23 = vld [vmem:[#allocation7 + $0x80] ss:$12 sps:$4 sm:$0xff]   ;;  %v2024_v25 = vld [vmem:[#allocation7 + $0x158] ss:$12 sps:$4 sm:$0xff]   ;;  %v2531_v47 = vmov 0.0  }
  0x43   :  { %566 = vmatprep.subr.bf16.mxu0 %v1986_v12  ;;  %1416 = vmatprep.subr.bf16.mxu1 %v1988_v13  ;;  %2589 = vst [vmem:[#allocation21_spill] sm:$0xff] %v2017_v23  ;;  %v2021_v24 = vld [vmem:[#allocation7 + $0x94] ss:$12 sps:$4 sm:$0xff]   ;;  %2591 = vst [vmem:[#allocation23_spill] sm:$0xff] %v2024_v25  ;;  %v2026_v26 = vld [vmem:[#allocation7 + $0x90] ss:$12 sps:$4 sm:$0xff]  }
  0x44   :  { %2590 = vst [vmem:[#allocation22_spill] sm:$0xff] %v2021_v24  ;;  %2592 = vst [vmem:[#allocation24_spill] sm:$0xff] %v2026_v26  ;;  %v2029_v27 = vld [vmem:[#allocation7 + $0x98] ss:$12 sps:$4 sm:$0xff]   ;;  %v2035_v29 = vld [vmem:[#allocation7 + $0x170] ss:$12 sps:$4 sm:$0xff]  }
  0x45   :  { %2593 = vst [vmem:[#allocation25_spill] sm:$0xff] %v2029_v27  ;;  %v2033_v28 = vld [vmem:[#allocation7 + $0xac] ss:$12 sps:$4 sm:$0xff]   ;;  %2595 = vst [vmem:[#allocation27_spill] sm:$0xff] %v2035_v29  ;;  %v2038_v30 = vld [vmem:[#allocation7 + $0xa8] ss:$12 sps:$4 sm:$0xff]  }
  0x46   :  { %567 = vmatpush1.bf16.msra.mxu0 %v1991_v14  ;;  %1417 = vmatpush3.bf16.msra.mxu1 %v1995_v15  ;;  %2594 = vst [vmem:[#allocation26_spill] sm:$0xff] %v2033_v28  ;;  %2596 = vst [vmem:[#allocation28_spill] sm:$0xff] %v2038_v30  ;;  %v2040_v31 = vld [vmem:[#allocation7 + $0xb0] ss:$12 sps:$4 sm:$0xff]   ;;  %v2067_v41 = vld [vmem:[#allocation7 + $0xc0] ss:$12 sps:$4 sm:$0xff]  }
  0x47   :  { %568 = vmatprep.subr.bf16.mxu0 %v1998_v16  ;;  %1418 = vmatprep.subr.bf16.mxu1 %v2000_v17  ;;  %2597 = vst [vmem:[#allocation29_spill] sm:$0xff] %v2040_v31  ;;  %v2045_v33 = vld [vmem:[#allocation7 + $0xc4] ss:$12 sps:$4 sm:$0xff]   ;;  %2603 = vst [vmem:[#allocation35_spill] sm:$0xff] %v2067_v41  ;;  %v2075_v46 = vld [vmem:[#allocation7 + $0xdc] ss:$12 sps:$4 sm:$0xff]  }
  0x48   :  { %2599 = vst [vmem:[#allocation31_spill] sm:$0xff] %v2045_v33  ;;  %v2047_v34 = vld [vmem:[#allocation2 + $0x20] sm:$0xff]  ;;  %2604 = vst [vmem:[#allocation36_spill] sm:$0xff] %v2075_v46  ;;  %v2080_v51 = vld [vmem:[#allocation7 + $0x188] ss:$12 sps:$4 sm:$0xff]   ;;  %vm1883_vm0 = vmmov 0  }
  0x49   :  { %2600 = vst [vmem:[#allocation32_spill] sm:$0xff] %v2047_v34  ;;  %v2049_v35 = vld [vmem:[#allocation2] sm:$0xff]  ;;  %v2055_v36 = vpack.c.bf16 %v2047_v34, %v2042_v32  ;;  %v2085_v53 = vld [vmem:[#allocation7 + $0xd8] ss:$12 sps:$4 sm:$0xff]   ;;  %v2088_v54 = vld [vmem:[#allocation7 + $0xf4] ss:$12 sps:$4 sm:$0xff]  }
  0x4a   :  { %569 = vmatpush1.bf16.msra.mxu0 %v2002_v18  ;;  %1419 = vmatpush3.bf16.msra.mxu1 %v2005_v19  ;;  %2601 = vst [vmem:[#allocation33_spill] sm:$0xff] %v2049_v35  ;;  %v2062_v38 = vpack.c.bf16 %v2057_v37, %v2049_v35  ;;  %2605 = vst [vmem:[#allocation37_spill] sm:$0xff] %v2085_v53  ;;  %v2092_v55 = vld [vmem:[#allocation7 + $0x1a0] ss:$12 sps:$4 sm:$0xff]   ;;  %v2098_v56 = vld [vmem:[#allocation7 + $0xf0] ss:$12 sps:$4 sm:$0xff]  }
  0x4b   :  { %570 = vmatprep.subr.bf16.mxu0 %v2009_v20  ;;  %1420 = vmatprep.subr.bf16.mxu1 %v2012_v21  ;;  %v162_v39 = vunpack.c.l.bf16 %v2055_v36  ;;  %v165_v40 = vunpack.c.h.bf16 %v2055_v36  ;;  %2606 = vst [vmem:[#allocation38_spill] sm:$0xff] %v2088_v54  ;;  %2607 = vst [vmem:[#allocation39_spill] sm:$0xff] %v2098_v56  ;;  %v2101_v57 = vld [vmem:[#allocation7 + $0x10c] ss:$12 sps:$4 sm:$0xff]   ;;  %v2108_v59 = vld [vmem:[#allocation7 + $0x108] ss:$12 sps:$4 sm:$0xff]  }
  0x4c   :  { %v161_v42 = vunpack.c.l.bf16 %v2062_v38  ;;  %v164_v43 = vunpack.c.h.bf16 %v2062_v38  ;;  %2608 = vst [vmem:[#allocation40_spill] sm:$0xff] %v2101_v57  ;;  %v2104_v58 = vld [vmem:[#allocation7 + $0x1b8] ss:$12 sps:$4 sm:$0xff]   ;;  %2609 = vst [vmem:[#allocation41_spill] sm:$0xff] %v2108_v59  ;;  %v2114_v61 = vld [vmem:[#allocation7 + $0x1d0] ss:$12 sps:$4 sm:$0xff]  }
  0x4d   :  { %v168_v44 = vsub.f32 %v2042_v32, %v162_v39  ;;  %v171_v45 = vsub.f32 %v2047_v34, %v165_v40  ;;  %v2111_v60 = vld [vmem:[#allocation7 + $0x124] ss:$12 sps:$4 sm:$0xff]   ;;  %v2118_v62 = vld [vmem:[#allocation7 + $0x120] ss:$12 sps:$4 sm:$0xff]   ;;  %v2121_v63 = vld [vmem:[#allocation7 + $0x1e8] ss:$12 sps:$4 sm:$0xff]  }
  0x4e   :  { %571 = vmatpush1.bf16.msra.mxu0 %v2014_v22  ;;  %1421 = vmatpush3.bf16.msra.mxu1 %v2017_v23  ;;  %v167_v48 = vsub.f32 %v2049_v35, %v161_v42  ;;  %v170_v49 = vsub.f32 %v2057_v37, %v164_v43  ;;  %2610 = vst [vmem:[#allocation42_spill] sm:$0xff] %v2111_v60  ;;  %2611 = vst [vmem:[#allocation43_spill] sm:$0xff] %v2118_v62  ;;  %v2123_v39 = vld [vmem:[#allocation7 + $0x13c] ss:$12 sps:$4 sm:$0xff]   ;;  %v2128_v42 = vld [vmem:[#allocation2 + $0x28] sm:$0xff]  ;;  %s1885_s2 = smov [#allocation8]  }
  0x4f   :  { %572 = vmatprep.subr.bf16.mxu0 %v2021_v24  ;;  %1422 = vmatprep.subr.bf16.mxu1 %v2024_v25  ;;  %v174_v50 = vpack.c.bf16 %v171_v45, %v168_v44  ;;  %2612 = vst [vmem:[#allocation44_spill] sm:$0xff] %v2123_v39  ;;  %v2125_v40 = vld [vmem:[#allocation2 + $0x10] sm:$0xff]  ;;  %2614 = vst [vmem:[#allocation46_spill] sm:$0xff] %v2128_v42  ;;  %v2132_v43 = vld [vmem:[#allocation7 + $0x138] ss:$12 sps:$4 sm:$0xff]   ;;  %s1325_s24 = sshll.u32 %s1885_s2, 4  ;;  %s1326_s24 = int_to_ptr.vmem [resolvable:$true] %s1325_s24 }
  0x50   :  { %v2083_v52 = vpack.c.bf16 %v170_v49, %v167_v48  ;;  %2613 = vst [vmem:[#allocation45_spill] sm:$0xff] %v2125_v40  ;;  %2615 = vst [vmem:[#allocation47_spill] sm:$0xff] %v2132_v43  ;;  %v2135_v44 = vld [vmem:[#allocation7 + $0x154] ss:$12 sps:$4 sm:$0xff]   ;;  %v2139_v45 = vpack.c.bf16 %v2128_v42, %v2125_v40  ;;  %v2146_v49 = vld [vmem:[#allocation7 + $0x150] ss:$12 sps:$4 sm:$0xff]   ;;  %p1852_p11 = scmp.lt.s32.totalorder %s1326_s24, %s1326_s24 }
  0x51   :  { %678 = vmatprep.mubr.bf16.mxu1 %v174_v50  ;;  %592 = vmatprep.mubr.bf16.mxu0 %v174_v50  ;;  %2616 = vst [vmem:[#allocation48_spill] sm:$0xff] %v2135_v44  ;;  %v2142_v48 = vld [vmem:[#allocation7 + $0x200] ss:$12 sps:$4 sm:$0xff]   ;;  %2617 = vst [vmem:[#allocation49_spill] sm:$0xff] %v2146_v49  ;;  %v2154_v32 = vld [vmem:[#allocation7 + $0x218] ss:$12 sps:$4 sm:$0xff]  }
  0x52   :  { %573 = vmatpush1.bf16.msra.mxu0 %v2026_v26  ;;  %1423 = vmatpush3.bf16.msra.mxu1 %v2029_v27  ;;  %v2149_v50 = vld [vmem:[#allocation7 + $0x16c] ss:$12 sps:$4 sm:$0xff]   ;;  %v163_v34 = vunpack.c.l.bf16 %v2139_v45  ;;  %v166_v37 = vunpack.c.h.bf16 %v2139_v45  ;;  %v2158_v35 = vld [vmem:[#allocation7 + $0x168] ss:$12 sps:$4 sm:$0xff]   ;;  %s1847_s25 = scalar_lea.vmem %s1326_s24, 768 }
  0x53   :  { %574 = vmatprep.subr.bf16.mxu0 %v2033_v28  ;;  %1424 = vmatprep.subr.bf16.mxu1 %v2035_v29  ;;  %2618 = vst [vmem:[#allocation50_spill] sm:$0xff] %v2149_v50  ;;  %2619 = vst [vmem:[#allocation51_spill] sm:$0xff] %v2158_v35  ;;  %p1848_p10 = scmp.ne.s32.totalorder %s1326_s24, %s1847_s25  ;;  %p1853_p12 = scmp.lt.s32.totalorder %s1847_s25, %s1847_s25 }
  0x55   :  { %p1854_p13 = por %p1853_p12, %p1852_p11 }
  0x56   :  { %575 = vmatpush1.bf16.msra.mxu0 %v2038_v30  ;;  %1425 = vmatpush3.bf16.msra.mxu1 %v2040_v31 }
  0x57   :  { %576 = vmatprep.subr.bf16.mxu0 %v2045_v33  ;;  %1534 = vmatprep.subr.bf16.mxu1 %v2531_v47  ;;  %p1855_p0 = pnand %p1854_p13, %p1848_p10 }
  0x59   :  { %679 = vmatmul.mubr.bf16.vlgmr.msra.gmra.mrb[0].mxu1 %v2083_v52 }
  0x5a   :  { %577 = vmatpush1.bf16.msra.mxu0 %v2067_v41  ;;  %1535 = vmatpush3.bf16.msra.mxu1 %v2080_v51 }
  0x5b   :  { %578 = vmatprep.subr.bf16.mxu0 %v2075_v46  ;;  %1550 = vmatprep.mubr.msk.bf16.mxu1 %vm1883_vm0, %v2531_v47 }
  0x5c   :  { %1536 = vmatprep.subr.bf16.mxu1 %v2531_v47 }
  0x5e   :  { %579 = vmatpush1.bf16.msra.mxu0 %v2085_v53  ;;  %1537 = vmatpush3.bf16.msra.mxu1 %v2092_v55 }
  0x5f   :  { %580 = vmatprep.subr.bf16.mxu0 %v2088_v54  ;;  %1538 = vmatprep.subr.bf16.mxu1 %v2531_v47 }
  0x62   :  { %581 = vmatpush1.bf16.msra.mxu0 %v2098_v56  ;;  %1539 = vmatpush3.bf16.msra.mxu1 %v2104_v58 }
  0x63   :  { %582 = vmatprep.subr.bf16.mxu0 %v2101_v57  ;;  %1540 = vmatprep.subr.bf16.mxu1 %v2531_v47 }
  0x66   :  { %583 = vmatpush1.bf16.msra.mxu0 %v2108_v59  ;;  %1541 = vmatpush3.bf16.msra.mxu1 %v2114_v61 }
  0x67   :  { %584 = vmatprep.subr.bf16.mxu0 %v2111_v60  ;;  %1542 = vmatprep.subr.bf16.mxu1 %v2531_v47  ;;  %v2170_v60 = vld [vmem:[#allocation7 + $0x180] ss:$12 sps:$4 sm:$0xff]  }
  0x6a   :  { %585 = vmatpush1.bf16.msra.mxu0 %v2118_v62  ;;  %1543 = vmatpush3.bf16.msra.mxu1 %v2121_v63  ;;  %v2166_v62 = vld [vmem:[#allocation7 + $0x230] ss:$12 sps:$4 sm:$0xff]  }
  0x6b   :  { %586 = vmatprep.subr.bf16.mxu0 %v2123_v39  ;;  %1544 = vmatprep.subr.bf16.mxu1 %v2531_v47  ;;  %v172_v39 = vsub.f32 %v2128_v42, %v166_v37  ;;  %v2182_v37 = vld [vmem:[#allocation7 + $0x1b4] ss:$12 sps:$4 sm:$0xff]  }
  0x6c   :  { %v2205_v42 = vld [vmem:[#allocation7 + $0x1e0] ss:$12 sps:$4 sm:$0xff]  }
  0x6e   :  { %587 = vmatpush1.bf16.msra.mxu0 %v2132_v43  ;;  %1545 = vmatpush3.bf16.msra.mxu1 %v2142_v48  ;;  %v2161_v43 = vld [vmem:[#allocation7 + $0x184] ss:$12 sps:$4 sm:$0xff]  }
  0x6f   :  { %588 = vmatprep.subr.bf16.mxu0 %v2135_v44  ;;  %1546 = vmatprep.subr.bf16.mxu1 %v2531_v47  ;;  %2620 = vst [vmem:[#allocation52_spill] sm:$0xff] %v2161_v43  ;;  %v169_v44 = vsub.f32 %v2125_v40, %v163_v34  ;;  %v2179_v34 = vld [vmem:[#allocation7 + $0x198] ss:$12 sps:$4 sm:$0xff]   ;;  %v2208_v40 = vld [vmem:[#allocation7 + $0x1fc] ss:$12 sps:$4 sm:$0xff]  }
  0x72   :  { %589 = vmatpush1.bf16.msra.mxu0 %v2146_v49  ;;  %1547 = vmatpush3.bf16.msra.mxu1 %v2154_v32  ;;  %v2173_v49 = vld [vmem:[#allocation7 + $0x19c] ss:$12 sps:$4 sm:$0xff]  }
  0x73   :  { %590 = vmatprep.subr.bf16.mxu0 %v2149_v50  ;;  %1548 = vmatprep.subr.bf16.mxu1 %v2531_v47  ;;  %v175_v50 = vpack.c.bf16 %v172_v39, %v169_v44  ;;  %v2533_v47 = vmov 0   ;;  %v2192_v39 = vld [vmem:[#allocation7 + $0x1cc] ss:$12 sps:$4 sm:$0xff]   ;;  %v2197_v44 = vld [vmem:[#allocation7 + $0x1c8] ss:$12 sps:$4 sm:$0xff]  }
  0x76   :  { %591 = vmatpush1.bf16.msra.mxu0 %v2158_v35  ;;  %1549 = vmatpush3.bf16.msra.mxu1 %v2166_v62 }
  0x77   :  { %603 = vmatprep.subr.bf16.mxu0 %v2161_v43  ;;  %1441 = vmatprep.subr.bf16.mxu1 %v1954_v1 }
  0x79   :  { %593 = vmatmul.mubr.bf16.vlgmr.msra.gmra.mrb[0].mxu0 %v2083_v52  ;;  %1551 = vmatmul.mubr.bf16.vlgmr.msra.gmra.mrb[4].mxu1 %v175_v50  ;;  %v2189_v52 = vld [vmem:[#allocation7 + $0x1b0] ss:$12 sps:$4 sm:$0xff]  }
  0x7a   :  { %604 = vmatpush1.bf16.msra.mxu0 %v2170_v60  ;;  %635 = vmatprep.mubr.bf16.mxu0 %v2533_v47  ;;  %v2200_v47 = vld [vmem:[#allocation7 + $0x1e4] ss:$12 sps:$4 sm:$0xff]  }
  0x7b   :  { %605 = vmatprep.subr.bf16.mxu0 %v2173_v49  ;;  %1442 = vmatpush3.bf16.msra.mxu1 %v1960_v3 }
  0x7c   :  { %846 = vmatprep.mubr.bf16.mxu1 %v2055_v36  ;;  %1443 = vmatprep.subr.bf16.mxu1 %v1966_v5 }
  0x7e   :  { %606 = vmatpush1.bf16.msra.mxu0 %v2179_v34 }
  0x7f   :  { %607 = vmatprep.subr.bf16.mxu0 %v2182_v37  ;;  %1444 = vmatpush3.bf16.msra.mxu1 %v1971_v7 }
  0x80   :  { %1445 = vmatprep.subr.bf16.mxu1 %v1977_v9  ;;  %v2213_v9 = vld [vmem:[#allocation7 + $0x1f8] ss:$12 sps:$4 sm:$0xff]  }
  0x82   :  { %608 = vmatpush1.bf16.msra.mxu0 %v2189_v52 }
  0x83   :  { %609 = vmatprep.subr.bf16.mxu0 %v2192_v39  ;;  %1446 = vmatpush3.bf16.msra.mxu1 %v1983_v11  ;;  %v2216_v11 = vld [vmem:[#allocation7 + $0x214] ss:$12 sps:$4 sm:$0xff]  }
  0x84   :  { %1447 = vmatprep.subr.bf16.mxu1 %v1988_v13  ;;  %v2221_v13 = vld [vmem:[#allocation7 + $0x210] ss:$12 sps:$4 sm:$0xff]  }
  0x86   :  { %610 = vmatpush1.bf16.msra.mxu0 %v2197_v44 }
  0x87   :  { %611 = vmatprep.subr.bf16.mxu0 %v2200_v47  ;;  %1448 = vmatpush3.bf16.msra.mxu1 %v1995_v15  ;;  %v2224_v15 = vld [vmem:[#allocation7 + $0x22c] ss:$12 sps:$4 sm:$0xff]  }
  0x88   :  { %1449 = vmatprep.subr.bf16.mxu1 %v2000_v17  ;;  %v2229_v17 = vld [vmem:[#allocation7 + $0x228] ss:$12 sps:$4 sm:$0xff]  }
  0x8a   :  { %612 = vmatpush1.bf16.msra.mxu0 %v2205_v42 }
  0x8b   :  { %613 = vmatprep.subr.bf16.mxu0 %v2208_v40  ;;  %1450 = vmatpush3.bf16.msra.mxu1 %v2005_v19 }
  0x8c   :  { %1451 = vmatprep.subr.bf16.mxu1 %v2012_v21 }
  0x8e   :  { %614 = vmatpush1.bf16.msra.mxu0 %v2213_v9 }
  0x8f   :  { %615 = vmatprep.subr.bf16.mxu0 %v2216_v11  ;;  %1452 = vmatpush3.bf16.msra.mxu1 %v2017_v23  ;;  %v2621_v23 = vmov 0.0  }
  0x90   :  { %1453 = vmatprep.subr.bf16.mxu1 %v2024_v25 }
  0x92   :  { %616 = vmatpush1.bf16.msra.mxu0 %v2221_v13 }
  0x93   :  { %617 = vmatprep.subr.bf16.mxu0 %v2224_v15  ;;  %1454 = vmatpush3.bf16.msra.mxu1 %v2029_v27 }
  0x94   :  { %1455 = vmatprep.subr.bf16.mxu1 %v2035_v29 }
  0x96   :  { %618 = vmatpush1.bf16.msra.mxu0 %v2229_v17 }
  0x97   :  { %728 = vmatprep.subr.bf16.mxu0 %v1952_v0  ;;  %1456 = vmatpush3.bf16.msra.mxu1 %v2040_v31 }
  0x98   :  { %1554 = vmatprep.subr.bf16.mxu1 %v2621_v23 }
  0x99   :  { %636 = vmatmul.mubr.bf16.vlgmr.msra.gmra.mrb[0].mxu0 %v175_v50  ;;  %v2625_v50 = vld [vmem:[#allocation47_spill] sm:$0xff] }
  0x9a   :  { %729 = vmatpush1.bf16.msra.mxu0 %v1957_v2  ;;  %760 = vmatprep.mubr.bf16.mxu0 %v2055_v36  ;;  %v2624_v36 = vld [vmem:[#allocation44_spill] sm:$0xff] }
  0x9b   :  { %730 = vmatprep.subr.bf16.mxu0 %v1963_v4  ;;  %847 = vmatmul.mubr.bf16.vlgmr.msra.gmra.mrb[8].mxu1 %v2062_v38 }
  0x9c   :  { %1555 = vmatpush3.bf16.msra.mxu1 %v2080_v51  ;;  %1570 = vmatprep.mubr.msk.bf16.mxu1 %vm1883_vm0, %v2621_v23 }
  0x9d   :  { %1556 = vmatprep.subr.bf16.mxu1 %v2621_v23 }
  0x9e   :  { %731 = vmatpush1.bf16.msra.mxu0 %v1968_v6 }
  0x9f   :  { %732 = vmatprep.subr.bf16.mxu0 %v1974_v8 }
  0xa0   :  { %1557 = vmatpush3.bf16.msra.mxu1 %v2092_v55 }
  0xa1   :  { %1558 = vmatprep.subr.bf16.mxu1 %v2621_v23 }
  0xa2   :  { %733 = vmatpush1.bf16.msra.mxu0 %v1979_v10 }
  0xa3   :  { %734 = vmatprep.subr.bf16.mxu0 %v1986_v12 }
  0xa4   :  { %1559 = vmatpush3.bf16.msra.mxu1 %v2104_v58 }
  0xa5   :  { %1560 = vmatprep.subr.bf16.mxu1 %v2621_v23 }
  0xa6   :  { %735 = vmatpush1.bf16.msra.mxu0 %v1991_v14 }
  0xa7   :  { %736 = vmatprep.subr.bf16.mxu0 %v1998_v16 }
  0xa8   :  { %1561 = vmatpush3.bf16.msra.mxu1 %v2114_v61 }
  0xa9   :  { %1562 = vmatprep.subr.bf16.mxu1 %v2621_v23 }
  0xaa   :  { %737 = vmatpush1.bf16.msra.mxu0 %v2002_v18 }
  0xab   :  { %738 = vmatprep.subr.bf16.mxu0 %v2009_v20 }
  0xac   :  { %1563 = vmatpush3.bf16.msra.mxu1 %v2121_v63 }
  0xad   :  { %1564 = vmatprep.subr.bf16.mxu1 %v2621_v23 }
  0xae   :  { %739 = vmatpush1.bf16.msra.mxu0 %v2014_v22 }
  0xaf   :  { %740 = vmatprep.subr.bf16.mxu0 %v2021_v24 }
  0xb0   :  { %1565 = vmatpush3.bf16.msra.mxu1 %v2142_v48 }
  0xb1   :  { %1566 = vmatprep.subr.bf16.mxu1 %v2621_v23 }
  0xb2   :  { %741 = vmatpush1.bf16.msra.mxu0 %v2026_v26 }
  0xb3   :  { %742 = vmatprep.subr.bf16.mxu0 %v2033_v28 }
  0xb4   :  { %1567 = vmatpush3.bf16.msra.mxu1 %v2154_v32 }
  0xb5   :  { %1568 = vmatprep.subr.bf16.mxu1 %v2621_v23 }
  0xb6   :  { %743 = vmatpush1.bf16.msra.mxu0 %v2038_v30 }
  0xb7   :  { %744 = vmatprep.subr.bf16.mxu0 %v2045_v33 }
  0xb8   :  { %1569 = vmatpush3.bf16.msra.mxu1 %v2166_v62 }
  0xb9   :  { %932 = vmatprep.subr.bf16.mxu1 %v1952_v0  ;;  %v2622_v0 = vld [vmem:[#allocation42_spill] sm:$0xff] }
  0xba   :  { %745 = vmatpush1.bf16.msra.mxu0 %v2067_v41 }
  0xbb   :  { %746 = vmatprep.subr.bf16.mxu0 %v2075_v46  ;;  %1571 = vmatmul.mubr.bf16.vlgmr.msra.gmra.mrb[4].mxu1 %v2139_v45 }
  0xbc   :  { %933 = vmatpush1.bf16.msra.mxu1 %v1957_v2  ;;  %v2623_v2 = vld [vmem:[#allocation43_spill] sm:$0xff] }
  0xbd   :  { %934 = vmatprep.subr.bf16.mxu1 %v1963_v4 }
  0xbe   :  { %747 = vmatpush1.bf16.msra.mxu0 %v2085_v53 }
  0xbf   :  { %748 = vmatprep.subr.bf16.mxu0 %v2088_v54 }
  0xc0   :  { %935 = vmatpush1.bf16.msra.mxu1 %v1968_v6 }
  0xc1   :  { %936 = vmatprep.subr.bf16.mxu1 %v1974_v8 }
  0xc2   :  { %749 = vmatpush1.bf16.msra.mxu0 %v2098_v56 }
  0xc3   :  { %750 = vmatprep.subr.bf16.mxu0 %v2101_v57 }
  0xc4   :  { %937 = vmatpush1.bf16.msra.mxu1 %v1979_v10  ;;  %v2626_v10 = vld [vmem:[#allocation48_spill] sm:$0xff] }
  0xc5   :  { %938 = vmatprep.subr.bf16.mxu1 %v1986_v12  ;;  %v2627_v12 = vld [vmem:[#allocation49_spill] sm:$0xff] }
  0xc6   :  { %751 = vmatpush1.bf16.msra.mxu0 %v2108_v59 }
  0xc7   :  { %752 = vmatprep.subr.bf16.mxu0 %v2622_v0 }
  0xc8   :  { %939 = vmatpush1.bf16.msra.mxu1 %v1991_v14  ;;  %v2628_v14 = vld [vmem:[#allocation50_spill] sm:$0xff] }
  0xc9   :  { %940 = vmatprep.subr.bf16.mxu1 %v1998_v16 }
  0xca   :  { %753 = vmatpush1.bf16.msra.mxu0 %v2623_v2 }
  0xcb   :  { %754 = vmatprep.subr.bf16.mxu0 %v2624_v36 }
  0xcc   :  { %941 = vmatpush1.bf16.msra.mxu1 %v2002_v18 }
  0xcd   :  { %942 = vmatprep.subr.bf16.mxu1 %v2009_v20 }
  0xce   :  { %755 = vmatpush1.bf16.msra.mxu0 %v2625_v50 }
  0xcf   :  { %756 = vmatprep.subr.bf16.mxu0 %v2626_v10 }
  0xd0   :  { %943 = vmatpush1.bf16.msra.mxu1 %v2014_v22  ;;  %v2629_v22 = vmov 0  }
  0xd1   :  { %944 = vmatprep.subr.bf16.mxu1 %v2021_v24 }
  0xd2   :  { %757 = vmatpush1.bf16.msra.mxu0 %v2627_v12 }
  0xd3   :  { %758 = vmatprep.subr.bf16.mxu0 %v2628_v14 }
  0xd4   :  { %945 = vmatpush1.bf16.msra.mxu1 %v2026_v26 }
  0xd5   :  { %946 = vmatprep.subr.bf16.mxu1 %v2033_v28 }
  0xd6   :  { %759 = vmatpush1.bf16.msra.mxu0 %v2158_v35 }
  0xd7   :  { %771 = vmatprep.subr.bf16.mxu0 %v2161_v43 }
  0xd8   :  { %947 = vmatpush1.bf16.msra.mxu1 %v2038_v30 }
  0xd9   :  { %761 = vmatmul.mubr.bf16.vlgmr.msra.gmra.mrb[0].mxu0 %v2062_v38  ;;  %948 = vmatprep.subr.bf16.mxu1 %v2045_v33  ;;  %v2630_v38 = vld [vmem:[#allocation12_spill] sm:$0xff] }
  0xda   :  { %772 = vmatpush1.bf16.msra.mxu0 %v2170_v60  ;;  %803 = vmatprep.mubr.bf16.mxu0 %v2629_v22 }
  0xdb   :  { %773 = vmatprep.subr.bf16.mxu0 %v2173_v49 }
  0xdc   :  { %949 = vmatpush1.bf16.msra.mxu1 %v2067_v41 }
  0xdd   :  { %950 = vmatprep.subr.bf16.mxu1 %v2075_v46 }
  0xde   :  { %774 = vmatpush1.bf16.msra.mxu0 %v2179_v34 }
  0xdf   :  { %775 = vmatprep.subr.bf16.mxu0 %v2182_v37 }
  0xe0   :  { %951 = vmatpush1.bf16.msra.mxu1 %v2085_v53 }
  0xe1   :  { %952 = vmatprep.subr.bf16.mxu1 %v2088_v54 }
  0xe2   :  { %776 = vmatpush1.bf16.msra.mxu0 %v2189_v52 }
  0xe3   :  { %777 = vmatprep.subr.bf16.mxu0 %v2192_v39 }
  0xe4   :  { %953 = vmatpush1.bf16.msra.mxu1 %v2098_v56 }
  0xe5   :  { %954 = vmatprep.subr.bf16.mxu1 %v2101_v57 }
  0xe6   :  { %778 = vmatpush1.bf16.msra.mxu0 %v2197_v44 }
  0xe7   :  { %779 = vmatprep.subr.bf16.mxu0 %v2200_v47 }
  0xe8   :  { %955 = vmatpush1.bf16.msra.mxu1 %v2108_v59 }
  0xe9   :  { %956 = vmatprep.subr.bf16.mxu1 %v2622_v0 }
  0xea   :  { %780 = vmatpush1.bf16.msra.mxu0 %v2205_v42 }
  0xeb   :  { %781 = vmatprep.subr.bf16.mxu0 %v2208_v40 }
  0xec   :  { %957 = vmatpush1.bf16.msra.mxu1 %v2623_v2 }
  0xed   :  { %958 = vmatprep.subr.bf16.mxu1 %v2624_v36 }
  0xee   :  { %782 = vmatpush1.bf16.msra.mxu0 %v2213_v9 }
  0xef   :  { %783 = vmatprep.subr.bf16.mxu0 %v2216_v11 }
  0xf0   :  { %959 = vmatpush1.bf16.msra.mxu1 %v2625_v50 }
  0xf1   :  { %960 = vmatprep.subr.bf16.mxu1 %v2626_v10  ;;  %v2632_v10 = vld [vmem:[#allocation16_spill] sm:$0xff] }
  0xf2   :  { %784 = vmatpush1.bf16.msra.mxu0 %v2221_v13 }
  0xf3   :  { %785 = vmatprep.subr.bf16.mxu0 %v2224_v15 }
  0xf4   :  { %961 = vmatpush1.bf16.msra.mxu1 %v2627_v12  ;;  %v2631_v12 = vld [vmem:[#allocation14_spill] sm:$0xff] }
  0xf5   :  { %962 = vmatprep.subr.bf16.mxu1 %v2628_v14  ;;  %v2633_v14 = vld [vmem:[#allocation18_spill] sm:$0xff] }
  0xf6   :  { %786 = vmatpush1.bf16.msra.mxu0 %v2229_v17 }
  0xf7   :  { %1472 = vmatprep.subr.bf16.mxu0 %v1954_v1  ;;  %v2634_v1 = vld [vmem:[#allocation19_spill] sm:$0xff] }
  0xf8   :  { %963 = vmatpush1.bf16.msra.mxu1 %v2158_v35 }
  0xf9   :  { %804 = vmatmul.mubr.bf16.vlgmr.msra.gmra.mrb[0].mxu0 %v2139_v45  ;;  %975 = vmatprep.subr.bf16.mxu1 %v2161_v43 }
  0xfa   :  { %1473 = vmatpush3.bf16.msra.mxu0 %v1960_v3  ;;  %v2635_v3 = vld [vmem:[#allocation21_spill] sm:$0xff] }
  0xfb   :  { %1474 = vmatprep.subr.bf16.mxu0 %v1966_v5 }
  0xfe   :  { %1475 = vmatpush3.bf16.msra.mxu0 %v1971_v7 }
  0xff   :  { %1476 = vmatprep.subr.bf16.mxu0 %v2630_v38 }
 0x102   :  { %1477 = vmatpush3.bf16.msra.mxu0 %v2631_v12 }
 0x103   :  { %1478 = vmatprep.subr.bf16.mxu0 %v2632_v10 }
 0x106   :  { %1479 = vmatpush3.bf16.msra.mxu0 %v2633_v14 }
 0x107   :  { %1480 = vmatprep.subr.bf16.mxu0 %v2634_v1 }
 0x10a   :  { %1481 = vmatpush3.bf16.msra.mxu0 %v2005_v19 }
 0x10b   :  { %1482 = vmatprep.subr.bf16.mxu0 %v2012_v21 }
 0x10e   :  { %1483 = vmatpush3.bf16.msra.mxu0 %v2635_v3 }
 0x10f   :  { %1484 = vmatprep.subr.bf16.mxu0 %v2024_v25  ;;  %v2636_v25 = vld [vmem:[#allocation45_spill] sm:$0xff] }
 0x112   :  { %1485 = vmatpush3.bf16.msra.mxu0 %v2029_v27 }
 0x113   :  { %1486 = vmatprep.subr.bf16.mxu0 %v2035_v29 }
 0x116   :  { %1487 = vmatpush3.bf16.msra.mxu0 %v2040_v31 }
 0x117   :  { %1574 = vmatprep.subr.bf16.mxu0 %v2621_v23 }
 0x12c   :  { %v1426_v45 = vpop.f32.mrb[0].mxu1 }
 0x12d   :  { %v1427_v43 = vpop.f32.mrb[1].mxu1 }
 0x12e   :  { %v1428_v35 = vadd.f32 %v1427_v43, %v1426_v45  ;;  %v1429_v50 = vpop.f32.mrb[2].mxu1 }
 0x12f   :  { %v1430_v36 = vpop.f32.mrb[3].mxu1 }
 0x130   :  { %v1431_v2 = vadd.f32 %v1430_v36, %v1429_v50  ;;  %v2637_v36 = vld [vmem:[#allocation46_spill] sm:$0xff] }
 0x16e   :  { %v1457_v0 = vpop.f32.mrb[8].mxu1 }
 0x16f   :  { %v1458_v59 = vpop.f32.mrb[9].mxu1 }
 0x170   :  { %v1459_v57 = vadd.f32 %v1458_v59, %v1457_v0  ;;  %v1460_v56 = vpop.f32.mrb[10].mxu1  ;;  %v2639_v0 = vld [vmem:[#allocation30_spill] sm:$0xff] }
 0x171   :  { %v1461_v54 = vpop.f32.mrb[11].mxu1 }
 0x172   :  { %v1462_v53 = vadd.f32 %v1461_v54, %v1460_v56  ;;  %v1614_v46 = vadd.f32 %v1459_v57, %v1428_v35 }
 0x174   :  { %v1616_v41 = vadd.f32 %v1462_v53, %v1431_v2 }
 0x18e   :  { %v889_v33 = vpop.f32.mrb[4].mxu1 }
 0x18f   :  { %v1615_v30 = vadd.f32 %v1614_v46, %v889_v33  ;;  %v1572_v29 = vpop.f32.mrb[5].mxu1 }
 0x190   :  { %v892_v31 = vpop.f32.mrb[6].mxu1 }
 0x191   :  { %v898_v28 = vmul.f32 0.020833334, %v1615_v30  ;;  %v1617_v27 = vadd.f32 %v1616_v41, %v892_v31  ;;  %v1573_v26 = vpop.f32.mrb[7].mxu1 }
 0x193   :  { %v904_v43 = vsub.f32 %v2636_v25, %v898_v28  ;;  %v901_v45 = vmul.f32 0.020833334, %v1617_v27  ;;  %v2638_v27 = vld [vmem:[#allocation33_spill] sm:$0xff] }
 0x195   :  { %v910_v24 = vmul.f32 %v904_v43, %v904_v43  ;;  %v907_v50 = vsub.f32 %v2637_v36, %v901_v45  ;;  %v2640_v45 = vld [vmem:[#allocation34_spill] sm:$0xff]  ;;  %v2641_v36 = vld [vmem:[#allocation32_spill] sm:$0xff] }
 0x197   :  { %v913_v3 = vmul.f32 %v907_v50, %v907_v50 }
 0x199   :  { %v2360_v59 = vpack.c.bf16 %v913_v3, %v910_v24 }
 0x19b   :  { %v922_v54 = vunpack.c.h.bf16 %v2360_v59  ;;  %v919_v35 = vunpack.c.l.bf16 %v2360_v59 }
 0x19d   :  { %v928_v53 = vsub.f32 %v913_v3, %v922_v54  ;;  %v925_v33 = vsub.f32 %v910_v24, %v919_v35 }
 0x19f   :  { %v2364_v29 = vpack.c.bf16 %v928_v53, %v925_v33 }
 0x1cc   :  { %v805_v30 = vpop.f32.mrb[0].mxu0 }
 0x1cd   :  { %v896_v31 = vmul.f32 0.020833334, %v805_v30  ;;  %v807_v26 = vpop.f32.mrb[1].mxu0 }
 0x1ce   :  { %v897_v41 = vmul.f32 0.020833334, %v807_v26  ;;  %v809_v28 = vpop.f32.mrb[2].mxu0 }
 0x1cf   :  { %v902_v46 = vsub.f32 %v2638_v27, %v896_v31  ;;  %v899_v56 = vmul.f32 0.020833334, %v809_v28  ;;  %v811_v57 = vpop.f32.mrb[3].mxu0 }
 0x1d0   :  { %v903_v2 = vsub.f32 %v2639_v0, %v897_v41  ;;  %v900_v43 = vmul.f32 0.020833334, %v811_v57 }
 0x1d1   :  { %v905_v50 = vsub.f32 %v2640_v45, %v899_v56  ;;  %v908_v3 = vmul.f32 %v902_v46, %v902_v46  ;;  %v1775_v46 = vld [vmem:[#allocation7] ss:$12 sps:$4 sm:$0xff]  }
 0x1d2   :  { %v906_v25 = vsub.f32 %v2641_v36, %v900_v43  ;;  %v909_v54 = vmul.f32 %v903_v2, %v903_v2  ;;  %v1774_v36 = vld [vmem:[#allocation7 + $0xc8] ss:$12 sps:$4 sm:$0xff]   ;;  %v2642_v43 = vld [vmem:[#allocation13_spill] sm:$0xff] }
 0x1d3   :  { %v911_v24 = vmul.f32 %v905_v50, %v905_v50  ;;  %v1776_v2 = vld [vmem:[#allocation7 + $0x8] ss:$12 sps:$4 sm:$0xff]   ;;  %v2644_v50 = vld [vmem:[#allocation17_spill] sm:$0xff] }
 0x1d4   :  { %v912_v35 = vmul.f32 %v906_v25, %v906_v25  ;;  %v1773_v25 = vld [vmem:[#allocation7 + $0x4] ss:$12 sps:$4 sm:$0xff]  }
 0x1d5   :  { %v2370_v53 = vpack.c.bf16 %v911_v24, %v908_v3 }
 0x1d6   :  { %v915_v33 = vpack.c.bf16 %v912_v35, %v909_v54 }
 0x1d7   :  { %v917_v30 = vunpack.c.l.bf16 %v2370_v53  ;;  %v920_v31 = vunpack.c.h.bf16 %v2370_v53 }
 0x1d8   :  { %v921_v26 = vunpack.c.h.bf16 %v915_v33  ;;  %v918_v28 = vunpack.c.l.bf16 %v915_v33 }
 0x1d9   :  { %v923_v27 = vsub.f32 %v908_v3, %v917_v30  ;;  %v926_v41 = vsub.f32 %v911_v24, %v920_v31  ;;  %v2660_v3 = vld [vmem:[#allocation39_spill] sm:$0xff]  ;;  %v2662_v24 = vld [vmem:[#allocation41_spill] sm:$0xff]  ;;  %v2669_v30 = vld [vmem:[#allocation50_spill] sm:$0xff] }
 0x1da   :  { %v927_v57 = vsub.f32 %v912_v35, %v921_v26  ;;  %v924_v0 = vsub.f32 %v909_v54, %v918_v28  ;;  %v2663_v54 = vld [vmem:[#allocation42_spill] sm:$0xff]  ;;  %v2665_v35 = vld [vmem:[#allocation44_spill] sm:$0xff] }
 0x1db   :  { %v929_v56 = vpack.c.bf16 %v926_v41, %v923_v27  ;;  %v2671_v31 = vld [vmem:[#allocation52_spill] sm:$0xff] }
 0x1dc   :  { %v930_v45 = vpack.c.bf16 %v927_v57, %v924_v0  ;;  %v157_v0 = vld [vmem:[#allocation5] sm:$0x7] }
 0x1de   :  { %964 = vmatprep.mubr.bf16.mxu1 %v930_v45  ;;  %1050 = vmatprep.mubr.bf16.mxu0 %v930_v45 }
 0x1df   :  { %965 = vmatmul.mubr.bf16.vlgmr.msra.gmra.mrb[12].mxu1 %v929_v56  ;;  %1051 = vmatmul.mubr.bf16.vlgmr.msra.gmra.mrb[4].mxu0 %v929_v56 }
 0x1e0   :  { %976 = vmatpush1.bf16.msra.mxu1 %v2170_v60  ;;  %1575 = vmatpush3.bf16.msra.mxu0 %v2080_v51 }
 0x1e1   :  { %977 = vmatprep.subr.bf16.mxu1 %v2173_v49  ;;  %1576 = vmatprep.subr.bf16.mxu0 %v2621_v23 }
 0x1e2   :  { %1007 = vmatprep.mubr.bf16.mxu1 %v2629_v22  ;;  %1590 = vmatprep.mubr.msk.bf16.mxu0 %vm1883_vm0, %v2621_v23 }
 0x1e4   :  { %978 = vmatpush1.bf16.msra.mxu1 %v2179_v34  ;;  %1577 = vmatpush3.bf16.msra.mxu0 %v2092_v55 }
 0x1e5   :  { %979 = vmatprep.subr.bf16.mxu1 %v2182_v37  ;;  %1578 = vmatprep.subr.bf16.mxu0 %v2621_v23 }
 0x1e8   :  { %980 = vmatpush1.bf16.msra.mxu1 %v2189_v52  ;;  %1579 = vmatpush3.bf16.msra.mxu0 %v2104_v58 }
 0x1e9   :  { %981 = vmatprep.subr.bf16.mxu1 %v2192_v39  ;;  %1580 = vmatprep.subr.bf16.mxu0 %v2621_v23 }
 0x1ec   :  { %982 = vmatpush1.bf16.msra.mxu1 %v2197_v44  ;;  %1581 = vmatpush3.bf16.msra.mxu0 %v2114_v61 }
 0x1ed   :  { %983 = vmatprep.subr.bf16.mxu1 %v2200_v47  ;;  %1582 = vmatprep.subr.bf16.mxu0 %v2621_v23 }
 0x1f0   :  { %984 = vmatpush1.bf16.msra.mxu1 %v2205_v42  ;;  %1583 = vmatpush3.bf16.msra.mxu0 %v2121_v63 }
 0x1f1   :  { %985 = vmatprep.subr.bf16.mxu1 %v2208_v40  ;;  %1584 = vmatprep.subr.bf16.mxu0 %v2621_v23 }
 0x1f4   :  { %986 = vmatpush1.bf16.msra.mxu1 %v2213_v9  ;;  %1585 = vmatpush3.bf16.msra.mxu0 %v2142_v48 }
 0x1f5   :  { %987 = vmatprep.subr.bf16.mxu1 %v2216_v11  ;;  %1586 = vmatprep.subr.bf16.mxu0 %v2621_v23 }
 0x1f8   :  { %988 = vmatpush1.bf16.msra.mxu1 %v2221_v13  ;;  %1587 = vmatpush3.bf16.msra.mxu0 %v2154_v32 }
 0x1f9   :  { %989 = vmatprep.subr.bf16.mxu1 %v2224_v15  ;;  %1588 = vmatprep.subr.bf16.mxu0 %v2621_v23 }
 0x1fc   :  { %990 = vmatpush1.bf16.msra.mxu1 %v2229_v17  ;;  %1589 = vmatpush3.bf16.msra.mxu0 %v2166_v62 }
 0x1fd   :  { %1100 = vmatprep.subr.bf16.mxu1 %v1773_v25  ;;  %1503 = vmatprep.subr.bf16.mxu0 %v1774_v36  ;;  %v2672_v25 = vld [vmem:[#allocation45_spill] sm:$0xff] }
 0x1ff   :  { %1008 = vmatmul.mubr.bf16.vlgmr.msra.gmra.mrb[12].mxu1 %v2364_v29  ;;  %1591 = vmatmul.mubr.bf16.vlgmr.msra.gmra.mrb[8].mxu0 %v2364_v29  ;;  %v2643_v29 = vld [vmem:[#allocation15_spill] sm:$0xff] }
 0x200   :  { %1101 = vmatpush1.bf16.msra.mxu1 %v1775_v46  ;;  %1132 = vmatprep.mubr.bf16.mxu1 %v915_v33 }
 0x201   :  { %1504 = vmatpush3.bf16.msra.mxu0 %v1776_v2  ;;  %1218 = vmatprep.mubr.bf16.mxu0 %v915_v33  ;;  %v2667_v33 = vld [vmem:[#allocation48_spill] sm:$0xff] }
 0x202   :  { %1102 = vmatprep.subr.bf16.mxu1 %v1963_v4  ;;  %1505 = vmatprep.subr.bf16.mxu0 %v1966_v5  ;;  %v2645_v4 = vld [vmem:[#allocation20_spill] sm:$0xff]  ;;  %v2646_v5 = vld [vmem:[#allocation21_spill] sm:$0xff] }
 0x204   :  { %1103 = vmatpush1.bf16.msra.mxu1 %v1968_v6  ;;  %v2647_v6 = vld [vmem:[#allocation22_spill] sm:$0xff] }
 0x205   :  { %1506 = vmatpush3.bf16.msra.mxu0 %v1971_v7  ;;  %1104 = vmatprep.subr.bf16.mxu1 %v1974_v8  ;;  %v2648_v7 = vld [vmem:[#allocation23_spill] sm:$0xff]  ;;  %v2649_v8 = vld [vmem:[#allocation24_spill] sm:$0xff] }
 0x206   :  { %1507 = vmatprep.subr.bf16.mxu0 %v2630_v38  ;;  %v2658_v38 = vld [vmem:[#allocation37_spill] sm:$0xff] }
 0x208   :  { %1105 = vmatpush1.bf16.msra.mxu1 %v2642_v43  ;;  %v2673_v43 = vld [vmem:[#allocation46_spill] sm:$0xff] }
 0x209   :  { %1508 = vmatpush3.bf16.msra.mxu0 %v2631_v12  ;;  %1106 = vmatprep.subr.bf16.mxu1 %v2643_v29  ;;  %v2651_v12 = vld [vmem:[#allocation26_spill] sm:$0xff] }
 0x20a   :  { %1509 = vmatprep.subr.bf16.mxu0 %v2632_v10  ;;  %v2650_v10 = vld [vmem:[#allocation25_spill] sm:$0xff] }
 0x20c   :  { %1107 = vmatpush1.bf16.msra.mxu1 %v2644_v50 }
 0x20d   :  { %1510 = vmatpush3.bf16.msra.mxu0 %v2633_v14  ;;  %1108 = vmatprep.subr.bf16.mxu1 %v1998_v16  ;;  %v2652_v14 = vld [vmem:[#allocation27_spill] sm:$0xff]  ;;  %v2653_v16 = vld [vmem:[#allocation28_spill] sm:$0xff] }
 0x20e   :  { %1511 = vmatprep.subr.bf16.mxu0 %v2634_v1  ;;  %v2659_v1 = vld [vmem:[#allocation38_spill] sm:$0xff] }
 0x210   :  { %1109 = vmatpush1.bf16.msra.mxu1 %v2002_v18  ;;  %v2654_v18 = vld [vmem:[#allocation29_spill] sm:$0xff] }
 0x211   :  { %1512 = vmatpush3.bf16.msra.mxu0 %v2005_v19  ;;  %1110 = vmatprep.subr.bf16.mxu1 %v2009_v20  ;;  %v2655_v19 = vld [vmem:[#allocation31_spill] sm:$0xff] }
 0x212   :  { %1513 = vmatprep.subr.bf16.mxu0 %v2012_v21  ;;  %v2656_v20 = vld [vmem:[#allocation35_spill] sm:$0xff]  ;;  %v2657_v21 = vld [vmem:[#allocation36_spill] sm:$0xff] }
 0x214   :  { %1111 = vmatpush1.bf16.msra.mxu1 %v2645_v4 }
 0x215   :  { %1514 = vmatpush3.bf16.msra.mxu0 %v2646_v5  ;;  %1112 = vmatprep.subr.bf16.mxu1 %v2647_v6 }
 0x216   :  { %1515 = vmatprep.subr.bf16.mxu0 %v2648_v7 }
 0x218   :  { %1113 = vmatpush1.bf16.msra.mxu1 %v2649_v8 }
 0x219   :  { %1516 = vmatpush3.bf16.msra.mxu0 %v2650_v10  ;;  %1114 = vmatprep.subr.bf16.mxu1 %v2651_v12 }
 0x21a   :  { %1517 = vmatprep.subr.bf16.mxu0 %v2652_v14 }
 0x21c   :  { %1115 = vmatpush1.bf16.msra.mxu1 %v2653_v16 }
 0x21d   :  { %1518 = vmatpush3.bf16.msra.mxu0 %v2654_v18  ;;  %1116 = vmatprep.subr.bf16.mxu1 %v2655_v19 }
 0x21e   :  { %1594 = vmatprep.subr.bf16.mxu0 %v2621_v23 }
 0x220   :  { %1219 = vmatmul.mubr.bf16.vlgmr.msra.gmra.mrb[12].mxu0 %v2370_v53  ;;  %1117 = vmatpush1.bf16.msra.mxu1 %v2656_v20 }
 0x221   :  { %1595 = vmatpush3.bf16.msra.mxu0 %v2080_v51  ;;  %1118 = vmatprep.subr.bf16.mxu1 %v2657_v21  ;;  %v2661_v51 = vld [vmem:[#allocation40_spill] sm:$0xff] }
 0x222   :  { %1596 = vmatprep.subr.bf16.mxu0 %v2621_v23  ;;  %1610 = vmatprep.mubr.msk.bf16.mxu0 %vm1883_vm0, %v2621_v23 }
 0x224   :  { %1119 = vmatpush1.bf16.msra.mxu1 %v2658_v38 }
 0x225   :  { %1597 = vmatpush3.bf16.msra.mxu0 %v2092_v55  ;;  %1120 = vmatprep.subr.bf16.mxu1 %v2659_v1  ;;  %v2664_v55 = vld [vmem:[#allocation43_spill] sm:$0xff] }
 0x226   :  { %1598 = vmatprep.subr.bf16.mxu0 %v2621_v23 }
 0x228   :  { %1121 = vmatpush1.bf16.msra.mxu1 %v2660_v3 }
 0x229   :  { %1599 = vmatpush3.bf16.msra.mxu0 %v2104_v58  ;;  %1122 = vmatprep.subr.bf16.mxu1 %v2661_v51  ;;  %v2666_v58 = vld [vmem:[#allocation47_spill] sm:$0xff] }
 0x22a   :  { %1600 = vmatprep.subr.bf16.mxu0 %v2621_v23 }
 0x22c   :  { %1123 = vmatpush1.bf16.msra.mxu1 %v2662_v24 }
 0x22d   :  { %1601 = vmatpush3.bf16.msra.mxu0 %v2114_v61  ;;  %1124 = vmatprep.subr.bf16.mxu1 %v2663_v54  ;;  %v2668_v61 = vld [vmem:[#allocation49_spill] sm:$0xff]  ;;  %v1777_v54 = vld [vmem:[#allocation2] sm:$0xff] }
 0x22e   :  { %1602 = vmatprep.subr.bf16.mxu0 %v2621_v23 }
 0x230   :  { %1125 = vmatpush1.bf16.msra.mxu1 %v2664_v55 }
 0x231   :  { %1603 = vmatpush3.bf16.msra.mxu0 %v2121_v63  ;;  %1126 = vmatprep.subr.bf16.mxu1 %v2665_v35  ;;  %v2670_v63 = vld [vmem:[#allocation51_spill] sm:$0xff] }
 0x232   :  { %1604 = vmatprep.subr.bf16.mxu0 %v2621_v23 }
 0x234   :  { %1127 = vmatpush1.bf16.msra.mxu1 %v2666_v58  ;;  %v1778_v58 = vld [vmem:[#allocation2 + $0x8] sm:$0xff] }
 0x235   :  { %1605 = vmatpush3.bf16.msra.mxu0 %v2142_v48  ;;  %1128 = vmatprep.subr.bf16.mxu1 %v2667_v33 }
 0x236   :  { %1606 = vmatprep.subr.bf16.mxu0 %v2621_v23 }
 0x238   :  { %1129 = vmatpush1.bf16.msra.mxu1 %v2668_v61 }
 0x239   :  { %1607 = vmatpush3.bf16.msra.mxu0 %v2154_v32  ;;  %1130 = vmatprep.subr.bf16.mxu1 %v2669_v30 }
 0x23a   :  { %1608 = vmatprep.subr.bf16.mxu0 %v2621_v23 }
 0x23c   :  { %1131 = vmatpush1.bf16.msra.mxu1 %v2670_v63  ;;  %v1779_v63 = vld [vmem:[#allocation2 + $0x18] sm:$0xff] }
 0x23d   :  { %1609 = vmatpush3.bf16.msra.mxu0 %v2166_v62  ;;  %1143 = vmatprep.subr.bf16.mxu1 %v2671_v31 }
 0x23f   :  { %1133 = vmatmul.mubr.bf16.vlgmr.msra.gmra.mrb[12].mxu1 %v2370_v53  ;;  %v1293_v53 = vlaneseq }
 0x240   :  { %1611 = vmatmul.mubr.bf16.vlgmr.msra.gmra.mrb[8].mxu0 %v2360_v59  ;;  %1144 = vmatpush1.bf16.msra.mxu1 %v2170_v60 }
 0x241   :  { %1145 = vmatprep.subr.bf16.mxu1 %v2173_v49  ;;  %1175 = vmatprep.mubr.bf16.mxu1 %v2629_v22  ;;  %v1294_v41 = vshrl.u32 %v1293_v53, 7 }
 0x243   :  { %v1303_v57 = vsub.s32 2, %v1294_v41  ;;  %v1295_v21 = vsub.s32 0, %v1294_v41  ;;  %v1299_v38 = vsub.s32 1, %v1294_v41 }
 0x244   :  { %1146 = vmatpush1.bf16.msra.mxu1 %v2179_v34 }
 0x245   :  { %1147 = vmatprep.subr.bf16.mxu1 %v2182_v37  ;;  %v1304_v56 = vrot.slane %v157_v0, %v1303_v57  ;;  %v1296_v1 = vrot.slane %v157_v0, %v1295_v21  ;;  %v1300_v51 = vrot.slane %v157_v0, %v1299_v38 }
 0x248   :  { %1148 = vmatpush1.bf16.msra.mxu1 %v2189_v52 }
 0x249   :  { %1149 = vmatprep.subr.bf16.mxu1 %v2192_v39 }
 0x24c   :  { %1150 = vmatpush1.bf16.msra.mxu1 %v2197_v44 }
 0x24d   :  { %1151 = vmatprep.subr.bf16.mxu1 %v2200_v47 }
 0x250   :  { %1152 = vmatpush1.bf16.msra.mxu1 %v2205_v42 }
 0x251   :  { %1153 = vmatprep.subr.bf16.mxu1 %v2208_v40 }
 0x254   :  { %1154 = vmatpush1.bf16.msra.mxu1 %v2213_v9 }
 0x255   :  { %1155 = vmatprep.subr.bf16.mxu1 %v2216_v11 }
 0x258   :  { %1156 = vmatpush1.bf16.msra.mxu1 %v2221_v13 }
 0x259   :  { %1157 = vmatprep.subr.bf16.mxu1 %v2224_v15 }
 0x25c   :  { %1158 = vmatpush1.bf16.msra.mxu1 %v2229_v17 }
 0x25f   :  { %1176 = vmatmul.mubr.bf16.vlgmr.msra.gmra.mrb[12].mxu1 %v2360_v59 }
 0x2b2   :  { %v1488_v22 = vpop.f32.mrb[4].mxu0 }
 0x2b3   :  { %v1489_v23 = vpop.f32.mrb[5].mxu0 }
 0x2b4   :  { %v1490_v32 = vadd.f32 %v1489_v23, %v1488_v22  ;;  %v1491_v47 = vpop.f32.mrb[6].mxu0  ;;  %v1780_v23 = vld [vmem:[#allocation2 + $0x20] sm:$0xff] }
 0x2b5   :  { %v1492_v60 = vpop.f32.mrb[7].mxu0 }
 0x2b6   :  { %v1493_v62 = vadd.f32 %v1492_v60, %v1491_v47 }
 0x2f3   :  { %v1519_v42 = vpop.f32.mrb[12].mxu0 }
 0x2f4   :  { %v1520_v40 = vpop.f32.mrb[13].mxu0 }
 0x2f5   :  { %v1521_v48 = vadd.f32 %v1520_v40, %v1519_v42  ;;  %v1522_v9 = vpop.f32.mrb[14].mxu0 }
 0x2f6   :  { %v1523_v49 = vpop.f32.mrb[15].mxu0 }
 0x2f7   :  { %v1524_v11 = vadd.f32 %v1523_v49, %v1522_v9  ;;  %v1618_v34 = vadd.f32 %v1521_v48, %v1490_v32 }
 0x2f9   :  { %v1620_v13 = vadd.f32 %v1524_v11, %v1493_v62 }
 0x313   :  { %v1261_v37 = vpop.f32.mrb[8].mxu0 }
 0x314   :  { %v1619_v15 = vadd.f32 %v1618_v34, %v1261_v37  ;;  %v1612_v52 = vpop.f32.mrb[9].mxu0 }
 0x315   :  { %v1264_v17 = vpop.f32.mrb[10].mxu0 }
 0x316   :  { %v1270_v39 = vmul.f32 0.020833334, %v1619_v15  ;;  %v1621_v44 = vadd.f32 %v1620_v13, %v1264_v17  ;;  %v1613_v59 = vpop.f32.mrb[11].mxu0 }
 0x318   :  { %v1276_v26 = vadd.f32 1e-05, %v1270_v39  ;;  %v1273_v28 = vmul.f32 0.020833334, %v1621_v44 }
 0x31a   :  { %1761 = vrsqrt.f32 %v1276_v26  ;;  %v1279_v27 = vadd.f32 1e-05, %v1273_v28 }
 0x31c   :  { %1763 = vrsqrt.f32 %v1279_v27 }
 0x324   :  { %v1762_v45 = vpop.eup %1761 }
 0x325   :  { %v1288_v36 = vmul.f32 %v1762_v45, %v2672_v25 }
 0x326   :  { %v1764_v46 = vpop.eup %1763 }
 0x327   :  { %v1310_v2 = vmul.f32 %v1304_v56, %v1288_v36  ;;  %v1291_v29 = vmul.f32 %v1764_v46, %v2673_v43 }
 0x329   :  { %1316 = vst [vmem:[#allocation8 + $0x10] sm:$0xff] %v1310_v2  ;;  %v1313_v50 = vmul.f32 %v1304_v56, %v1291_v29 }
 0x32b   :  { %1319 = vst [vmem:[#allocation8 + $0x28] sm:$0xff] %v1313_v50 }
 0x332   :  { %v1177_v4 = vpop.f32.mrb[12].mxu1 }
 0x333   :  { %v1268_v5 = vmul.f32 0.020833334, %v1177_v4  ;;  %v1179_v6 = vpop.f32.mrb[13].mxu1 }
 0x334   :  { %v1269_v7 = vmul.f32 0.020833334, %v1179_v6  ;;  %v1181_v8 = vpop.f32.mrb[14].mxu1 }
 0x335   :  { %v1274_v10 = vadd.f32 1e-05, %v1268_v5  ;;  %v1271_v12 = vmul.f32 0.020833334, %v1181_v8  ;;  %v1183_v14 = vpop.f32.mrb[15].mxu1 }
 0x336   :  { %v1275_v16 = vadd.f32 1e-05, %v1269_v7  ;;  %v1272_v18 = vmul.f32 0.020833334, %v1183_v14 }
 0x337   :  { %1765 = vrsqrt.f32 %v1274_v10  ;;  %v1277_v19 = vadd.f32 1e-05, %v1271_v12 }
 0x338   :  { %1767 = vrsqrt.f32 %v1275_v16  ;;  %v1278_v20 = vadd.f32 1e-05, %v1272_v18 }
 0x339   :  { %1769 = vrsqrt.f32 %v1277_v19 }
 0x33a   :  { %1771 = vrsqrt.f32 %v1278_v20 }
 0x341   :  { %v1766_v3 = vpop.eup %1765 }
 0x342   :  { %v1768_v24 = vpop.eup %1767  ;;  %v1286_v55 = vmul.f32 %v1777_v54, %v1766_v3 }
 0x343   :  { %v1770_v35 = vpop.eup %1769  ;;  %v1287_v33 = vmul.f32 %v1778_v58, %v1768_v24 }
 0x344   :  { %v1772_v61 = vpop.eup %1771  ;;  %v1308_v30 = vmul.f32 %v1296_v1, %v1286_v55  ;;  %v1289_v31 = vmul.f32 %v1779_v63, %v1770_v35 }
 0x345   :  { %v1309_v22 = vmul.f32 %v1300_v51, %v1287_v33  ;;  %v1290_v32 = vmul.f32 %v1780_v23, %v1772_v61 }
 0x346   :  { %1314 = vst [vmem:[#allocation8] sm:$0xff] %v1308_v30  ;;  %v1311_v47 = vmul.f32 %v1296_v1, %v1289_v31 }
 0x347   :  { %1315 = vst [vmem:[#allocation8 + $0x8] sm:$0xff] %v1309_v22  ;;  %v1312_v60 = vmul.f32 %v1300_v51, %v1290_v32 }
 0x348   :  { %1317 = vst [vmem:[#allocation8 + $0x18] sm:$0xff] %v1311_v47 }
 0x349   :  { %1318 = vst [vmem:[#allocation8 + $0x20] sm:$0xff] %v1312_v60 }
 0x34a   :  { %1858 = shalt.err (!%p1855_p0)
}
 0x34b   :  { %s1859_s28 = scalar_lea.hbm %s2512_s3, 768 }
 0x34c   :  { %p1860_p1 = scmp.ne.s32.totalorder %s2512_s3, %s1859_s28  ;;  %p1863_p2 = scmp.lt.u32.totalorder %s1859_s28, %s2512_s3 }
 0x34e   :  { %p1865_p3 = pnand %p1863_p2, %p1860_p1 }
 0x350   :  { %1868 = shalt.err (!%p1865_p3)
}
 0x351   :  { %1331 = dma.vmem_to_hbm [thread:$0]  %s1326_s24, 768, %s2512_s3, [#allocation4], %s1877_s1, %s1877_s1, %s1878_s8  }
 0x352   :  { %1873 = dma.done.wait [#allocation4], 768  }
 0x353   :  { %1874 = vsyncadd [#allocation4], 4294966528 }
 0x354   :  { %1335 = vsyncpa [#allocation3], 1 }
 0x355   :  { %1336 = vsyncpa [#allocation6], 1 }
 0x356   :  { %1337 = vsyncpa [#allocation4], 1 }

</bundles_post_ra>
